<compile_context>
chip_gen: v6e
topology: v6e:2x2x1
jax: 0.10.0
libtpu: 0.0.40
codegen_flags: <defaults>
</compile_context>

<pallas_src>
import functools

import numpy as np
import jax
import jax.numpy as jnp
from jax import lax
from jax.experimental import pallas as pl
from jax.experimental.pallas import tpu as pltpu

EPS = 1e-5
LANES = 128

# Version-robust alias (new name per current Pallas API, old name as fallback).
_CompilerParams = getattr(pltpu, "CompilerParams", None) or getattr(pltpu, "TPUCompilerParams")


def _round_up(x, m):
    return (x + m - 1) // m * m


def _pick_tm(m_total, cap=512):
    """Row-tile: <= cap, multiple of 16 (bf16 sublane packing). M is padded up to it."""
    if m_total >= cap:
        return cap
    return max(16, _round_up(m_total, 16))


def _phys_vmem_cap():
    try:
        return int(pltpu.get_tpu_info().vmem_capacity_bytes * 3 // 4)
    except Exception:
        return 48 * 1024 * 1024   # safe on every generation (v7x has 64 MiB / TC)


_VMEM_CAP = _phys_vmem_cap()


def _vmem_limit(blocks):
    """blocks: list of (block_shape, dtype). Assume double buffering + 1.5x margin."""
    need = 0
    for shp, dt in blocks:
        n = 1
        for d in shp:
            n *= int(d)
        need += 2 * n * np.dtype(dt).itemsize
    lim = int(need * 1.5) + (4 << 20)
    return max(16 << 20, min(lim, _VMEM_CAP))


# ---------------------------------------------------------------------------
# Kernel A: conv matmul + per-tile batch statistics (one M-tile per grid step)
#   refs = [p_0, w_0, ..., p_{n-1}, w_{n-1}, y_0, st_0, ..., y_{n-1}, st_{n-1}]
# ---------------------------------------------------------------------------
def _conv_stats_kernel(*refs, n_br):
    for b in range(n_br):
        p_ref = refs[2 * b]
        w_ref = refs[2 * b + 1]
        y_ref = refs[2 * n_br + 2 * b]
        st_ref = refs[2 * n_br + 2 * b + 1]          # (8, Cpad): row0=sum, row1=sumsq

        y = jnp.dot(p_ref[...], w_ref[...],
                    preferred_element_type=jnp.float32)        # (tm, Cpad) f32
        y_ref[...] = y.astype(y_ref.dtype)                     # conv output written ONCE
        st_ref[0:1, :] = jnp.sum(y, axis=0, keepdims=True)
        st_ref[1:2, :] = jnp.sum(y * y, axis=0, keepdims=True)
        st_ref[2:8, :] = jnp.zeros((6, y.shape[1]), jnp.float32)


def conv_stats_pass(branches, tm):
    """branches: list of (patches bf16 (Mpad, Kpad), w bf16 (Kpad, Cpad)).

    Returns flat tuple (y_0, stats_0, y_1, stats_1, ...); stats_b is (n_m*8, Cpad) f32
    with per-tile partial sums in rows 0 (sum) and 1 (sum of squares).
    """
    m_pad = branches[0][0].shape[0]
    c_pad = branches[0][1].shape[1]
    n_m = m_pad // tm

    inputs, in_specs, out_shapes, out_specs, blocks = [], [], [], [], []
    for p, w in branches:
        kp = p.shape[1]
        inputs += [p, w]
        in_specs += [pl.BlockSpec((tm, kp), lambda m: (m, 0)),
                     pl.BlockSpec((kp, c_pad), lambda m: (0, 0))]
        out_shapes += [jax.ShapeDtypeStruct((m_pad, c_pad), jnp.bfloat16),
                       jax.ShapeDtypeStruct((n_m * 8, c_pad), jnp.float32)]
        out_specs += [pl.BlockSpec((tm, c_pad), lambda m: (m, 0)),
                      pl.BlockSpec((8, c_pad), lambda m: (m, 0))]
        blocks += [((tm, kp), jnp.bfloat16), ((kp, c_pad), jnp.bfloat16),
                   ((tm, c_pad), jnp.bfloat16), ((8, c_pad), jnp.float32)]

    kernel = functools.partial(_conv_stats_kernel, n_br=len(branches))
    return pl.pallas_call(
        kernel,
        out_shape=tuple(out_shapes),
        grid_spec=pltpu.PrefetchScalarGridSpec(
            num_scalar_prefetch=0,
            grid=(n_m,),
            in_specs=in_specs,
            out_specs=tuple(out_specs)),
        compiler_params=_CompilerParams(
            dimension_semantics=("parallel",),          # independent M tiles -> both TCs on v7x
            vmem_limit_bytes=_vmem_limit(blocks)),
    )(*inputs)


# ---------------------------------------------------------------------------
# Kernel B: BN apply (+ residual) (+ ReLU) epilogue
#   refs = [y_0, ss_0, ..., y_{n-1}, ss_{n-1}, (res), out]
# ---------------------------------------------------------------------------
def _bn_apply_kernel(*refs, n_br, has_res, relu):
    o_ref = refs[2 * n_br + (1 if has_res else 0)]
    acc = None
    for b in range(n_br):
        y = refs[2 * b][...].astype(jnp.float32)
        ss = refs[2 * b + 1]                            # (8, Cpad): row0=scale, row1=shift
        v = y * ss[0:1, :] + ss[1:2, :]
        acc = v if acc is None else acc + v
    if has_res:
        acc = acc + refs[2 * n_br][...].astype(jnp.float32)
    if relu:
        acc = jnp.maximum(acc, 0.0)
    o_ref[...] = acc.astype(o_ref.dtype)


def bn_apply_pass(ys, sss, residual, relu, out_dtype, tm):
    m_pad, c_pad = ys[0].shape
    n_m = m_pad // tm

    inputs, in_specs, blocks = [], [], []
    for y, ss in zip(ys, sss):
        inputs += [y, ss]
        in_specs += [pl.BlockSpec((tm, c_pad), lambda m: (m, 0)),
                     pl.BlockSpec((8, c_pad), lambda m: (0, 0))]
        blocks += [((tm, c_pad), y.dtype), ((8, c_pad), jnp.float32)]
    has_res = residual is not None
    if has_res:
        inputs.append(residual)
        in_specs.append(pl.BlockSpec((tm, c_pad), lambda m: (m, 0)))
        blocks.append(((tm, c_pad), residual.dtype))
    blocks.append(((tm, c_pad), out_dtype))

    kernel = functools.partial(_bn_apply_kernel, n_br=len(ys), has_res=has_res, relu=relu)
    return pl.pallas_call(
        kernel,
        out_shape=jax.ShapeDtypeStruct((m_pad, c_pad), out_dtype),
        grid_spec=pltpu.PrefetchScalarGridSpec(
            num_scalar_prefetch=0,
            grid=(n_m,),
            in_specs=in_specs,
            out_specs=pl.BlockSpec((tm, c_pad), lambda m: (m, 0))),
        compiler_params=_CompilerParams(
            dimension_semantics=("parallel",),
            vmem_limit_bytes=_vmem_limit(blocks)),
    )(*inputs)


# ---------------------------------------------------------------------------
# Glue (plain JAX): im2col, weight reshaping, padding, folded-BN scale/shift
# ---------------------------------------------------------------------------
def im2col(x_nhwc, ksize, stride, pad):
    N, H, W, C = x_nhwc.shape
    Ho = (H + 2 * pad - ksize) // stride + 1
    Wo = (W + 2 * pad - ksize) // stride + 1
    xp = jnp.pad(x_nhwc, ((0, 0), (pad, pad), (pad, pad), (0, 0)))
    cols = []
    for kh in range(ksize):
        for kw in range(ksize):
            sl = xp[:, kh:kh + (Ho - 1) * stride + 1:stride,
                       kw:kw + (Wo - 1) * stride + 1:stride, :]
            cols.append(sl)
    patches = jnp.concatenate(cols, axis=-1)            # (N, Ho, Wo, k*k*C)
    return patches.reshape(N * Ho * Wo, ksize * ksize * C), (Ho, Wo)


def weight_matrix(w_oihw, c_pad):
    """(O, I, kh, kw) -> (Kpad, Cpad) bf16, matching im2col's (kh, kw, c) ordering."""
    O, I, kh, kw = w_oihw.shape
    K = kh * kw * I
    k_pad = _round_up(K, LANES)
    w_mat = jnp.transpose(w_oihw, (2, 3, 1, 0)).reshape(K, O)
    return jnp.pad(w_mat, ((0, k_pad - K), (0, c_pad - O))).astype(jnp.bfloat16)


def pad_patches(p, m_pad):
    K = p.shape[1]
    k_pad = _round_up(K, LANES)
    return jnp.pad(p.astype(jnp.bfloat16),
                   ((0, m_pad - p.shape[0]), (0, k_pad - K)))


def fold_bn(stats_tiles, m_true, gamma, beta, c_pad, eps=EPS):
    """Reduce per-tile partial sums -> folded (scale, shift), packed as (8, Cpad) f32."""
    n_rows = stats_tiles.shape[0]
    s = stats_tiles.reshape(n_rows // 8, 8, c_pad).sum(axis=0)     # (8, Cpad)
    inv_m = 1.0 / float(m_true)
    mean = s[0] * inv_m
    var = jnp.maximum(s[1] * inv_m - mean * mean, 0.0)
    g = jnp.pad(gamma.astype(jnp.float32), (0, c_pad - gamma.shape[0]))
    b = jnp.pad(beta.astype(jnp.float32), (0, c_pad - beta.shape[0]))
    scale = g * lax.rsqrt(var + eps)
    shift = b - mean * scale
    return jnp.concatenate(
        [scale[None], shift[None], jnp.zeros((6, c_pad), jnp.float32)], axis=0)


# ---------------------------------------------------------------------------
# Block forward
# ---------------------------------------------------------------------------
def block_forward(x_nchw, params, s):
    x = jnp.transpose(x_nchw, (0, 2, 3, 1)).astype(jnp.float32)    # NCHW -> NHWC
    N, H, W, c_in = x.shape
    out_c = params["w1"].shape[0]
    c_pad = _round_up(out_c, LANES)

    # ---- stage 1: conv1 (3x3, stride s) -> BN -> ReLU
    p1, (Ho, Wo) = im2col(x, 3, s, 1)
    m1 = p1.shape[0]
    tm1 = _pick_tm(m1)
    m1_pad = _round_up(m1, tm1)
    br1 = (pad_patches(p1, m1_pad), weight_matrix(params["w1"], c_pad))
    y1, st1 = conv_stats_pass([br1], tm1)
    ss1 = fold_bn(st1, m1, params["g1"], params["be1"], c_pad)
    h1 = bn_apply_pass([y1], [ss1], None, relu=True, out_dtype=jnp.bfloat16, tm=tm1)
    h1_nhwc = h1[:m1, :out_c].reshape(N, Ho, Wo, out_c)

    # ---- stage 2: conv2 (3x3, stride 1) -> BN (+ identity / fused downsample) -> ReLU
    p2, _ = im2col(h1_nhwc, 3, 1, 1)
    m2 = p2.shape[0]
    tm2 = _pick_tm(m2)
    m2_pad = _round_up(m2, tm2)
    branches = [(pad_patches(p2, m2_pad), weight_matrix(params["w2"], c_pad))]
    bn_params = [(params["g2"], params["be2"])]
    residual = None
    if s != 1:
        # downsample identity: 1x1 conv, stride 2, pad 0 + BN, fused as a 2nd matmul branch
        p_id = x[:, ::2, ::2, :].reshape(-1, c_in)
        branches.append((pad_patches(p_id, m2_pad), weight_matrix(params["w_id"], c_pad)))
        bn_params.append((params["g_id"], params["be_id"]))
    else:
        assert c_in == out_c, "s == 1 identity path requires in_c == out_c"
        res = x.reshape(N * H * W, c_in).astype(jnp.bfloat16)
        residual = jnp.pad(res, ((0, m2_pad - m2), (0, c_pad - c_in)))

    outs = conv_stats_pass(branches, tm2)
    ys = [outs[2 * i] for i in range(len(branches))]
    sss = [fold_bn(outs[2 * i + 1], m2, g, b, c_pad)
           for i, (g, b) in enumerate(bn_params)]
    h2 = bn_apply_pass(ys, sss, residual, relu=True, out_dtype=jnp.bfloat16, tm=tm2)

    out = h2[:m2, :out_c].reshape(N, Ho, Wo, out_c).astype(jnp.float32)
    return jnp.transpose(out, (0, 3, 1, 2))                        # back to NCHW


# ---------------------------------------------------------------------------
# Pure-JAX reference (validation only; includes the conv biases that BN cancels)
# ---------------------------------------------------------------------------
def ref_conv(x, w, b, stride, pad):
    y = lax.conv_general_dilated(
        x, w, window_strides=(stride, stride),
        padding=[(pad, pad), (pad, pad)],
        dimension_numbers=("NCHW", "OIHW", "NCHW"))
    return y + b[None, :, None, None]


def ref_bn(y, g, be):
    mean = y.mean(axis=(0, 2, 3), keepdims=True)
    var = ((y - mean) ** 2).mean(axis=(0, 2, 3), keepdims=True)
    return (y - mean) * lax.rsqrt(var + EPS) * g[None, :, None, None] \
        + be[None, :, None, None]


def ref_block(x, params, s):
    y = jax.nn.relu(ref_bn(ref_conv(x, params["w1"], params["b1"], s, 1),
                           params["g1"], params["be1"]))
    y = ref_bn(ref_conv(y, params["w2"], params["b2"], 1, 1),
               params["g2"], params["be2"])
    if s != 1:
        ident = ref_bn(ref_conv(x, params["w_id"], params["b_id"], 2, 0),
                       params["g_id"], params["be_id"])
    else:
        ident = x
    return jax.nn.relu(y + ident)


# ---------------------------------------------------------------------------
# Deterministic parameter init (shapes from the torch module __init__)
# ---------------------------------------------------------------------------
def init_params(key, in_c, out_c, s):
    ks = jax.random.split(key, 12)
    p = {
        "w1": jax.random.normal(ks[0], (out_c, in_c, 3, 3), jnp.float32) * 0.1,
        "b1": jax.random.normal(ks[1], (out_c,), jnp.float32) * 0.05,
        "g1": 1.0 + jax.random.normal(ks[2], (out_c,), jnp.float32) * 0.1,
        "be1": jax.random.normal(ks[3], (out_c,), jnp.float32) * 0.05,
        "w2": jax.random.normal(ks[4], (out_c, out_c, 3, 3), jnp.float32) * 0.1,
        "b2": jax.random.normal(ks[5], (out_c,), jnp.float32) * 0.05,
        "g2": 1.0 + jax.random.normal(ks[6], (out_c,), jnp.float32) * 0.1,
        "be2": jax.random.normal(ks[7], (out_c,), jnp.float32) * 0.05,
    }
    if s != 1:
        p.update({
            "w_id": jax.random.normal(ks[8], (out_c, in_c, 1, 1), jnp.float32) * 0.1,
            "b_id": jax.random.normal(ks[9], (out_c,), jnp.float32) * 0.05,
            "g_id": 1.0 + jax.random.normal(ks[10], (out_c,), jnp.float32) * 0.1,
            "be_id": jax.random.normal(ks[11], (out_c,), jnp.float32) * 0.05,
        })
    return p


def _rel_err(y, y_ref):
    return float(jnp.linalg.norm(y - y_ref) / (jnp.linalg.norm(y_ref) + 1e-12))


if __name__ == "__main__":
    key = jax.random.PRNGKey(0)
    block_fn = jax.jit(block_forward, static_argnums=2)

    # Case 1: downsampling block (s=2, fused 1x1-conv identity branch), 16x16 spatial
    in_c, out_c, s = 4, 8, 2
    N, H, W = 2, 16, 16
    params = init_params(jax.random.fold_in(key, 1), in_c, out_c, s)
    x = jax.random.normal(jax.random.fold_in(key, 2), (N, in_c, H, W), jnp.float32)
    y = jax.block_until_ready(block_fn(x, params, s))
    y_ref = ref_block(x, params, s)
    assert y.shape == (N, out_c, H // 2, W // 2), y.shape
    err1 = _rel_err(y, y_ref)
    assert err1 < 5e-2, f"case1 relative L2 error too large: {err1}"

    # Case 2: plain block (s=1, identity = x); 24x24 spatial -> M=1152 exercises
    # multi-tile grids (tm=512, n_m=3) AND the M-padding path (1152 -> 1536).
    in_c2, out_c2, s2 = 8, 8, 1
    N2, H2, W2 = 2, 24, 24
    params2 = init_params(jax.random.fold_in(key, 3), in_c2, out_c2, s2)
    x2 = jax.random.normal(jax.random.fold_in(key, 4), (N2, in_c2, H2, W2), jnp.float32)
    y2 = jax.block_until_ready(block_fn(x2, params2, s2))
    y2_ref = ref_block(x2, params2, s2)
    assert y2.shape == (N2, out_c2, H2, W2), y2.shape
    err2 = _rel_err(y2, y2_ref)
    assert err2 < 5e-2, f"case2 relative L2 error too large: {err2}"

    print("KERNEL_OK")
</pallas_src>

<mosaic_0001>
module attributes {stable_mosaic.version = 11 : i64} {
  func.func @_conv_stats_kernel(%arg0: i32, %arg1: memref<128x128xbf16, #tpu.memory_space<vmem>>, %arg2: memref<128x128xbf16, #tpu.memory_space<vmem>>, %arg3: memref<128x128xbf16, #tpu.memory_space<vmem>>, %arg4: memref<8x128xf32, #tpu.memory_space<vmem>>) attributes {dimension_semantics = [#tpu.dimension_semantics<parallel>], iteration_bounds = array<i64: 1>, scalar_prefetch = 0 : i64, scratch_operands = 0 : i64, tpu.core_type = #tpu.core_type<tc>, window_params = [{transform_indices = @transform_0, window_bounds = array<i64: 128, 128>}, {pipeline_mode = #tpu.pipeline_mode<synchronous>, transform_indices = @transform_1, window_bounds = array<i64: 128, 128>}, {transform_indices = @transform_2, window_bounds = array<i64: 128, 128>}, {transform_indices = @transform_3, window_bounds = array<i64: 8, 128>}]} {
    %c0 = arith.constant 0 : index
    %c0_0 = arith.constant 0 : index
    %0 = vector.load %arg1[%c0, %c0_0] : memref<128x128xbf16, #tpu.memory_space<vmem>>, vector<128x128xbf16>
    %c0_1 = arith.constant 0 : index
    %c0_2 = arith.constant 0 : index
    %1 = vector.load %arg2[%c0_1, %c0_2] : memref<128x128xbf16, #tpu.memory_space<vmem>>, vector<128x128xbf16>
    %cst = arith.constant dense<0.000000e+00> : vector<128x128xf32>
    %2 = tpu.matmul %0, %1, %cst {dimension_numbers = #tpu.dot_dimension_numbers<[1], [0], [0], [1], [0, 0, 1, 1], [], []>} : vector<128x128xbf16>, vector<128x128xbf16>, vector<128x128xf32> -> vector<128x128xf32>
    %3 = arith.truncf %2 : vector<128x128xf32> to vector<128x128xbf16>
    %c0_3 = arith.constant 0 : index
    %c0_4 = arith.constant 0 : index
    %4 = vector.load %arg3[%c0_3, %c0_4] : memref<128x128xbf16, #tpu.memory_space<vmem>>, vector<128x128xbf16>
    tpu.vector_store %arg3[%c0_3, %c0_4], %3 {strides = array<i32>} : memref<128x128xbf16, #tpu.memory_space<vmem>>, vector<128x128xbf16>,
    %cst_5 = arith.constant dense<0.000000e+00> : vector<128xf32>
    %5 = vector.multi_reduction <add>, %2, %cst_5 [0] : vector<128x128xf32> to vector<128xf32>
    %6 = vector.shape_cast %5 : vector<128xf32> to vector<1x128xf32>
    %c0_6 = arith.constant 0 : index
    %c0_7 = arith.constant 0 : index
    %7 = vector.load %arg4[%c0_6, %c0_7] : memref<8x128xf32, #tpu.memory_space<vmem>>, vector<1x128xf32>
    tpu.vector_store %arg4[%c0_6, %c0_7], %6 {strides = array<i32>} : memref<8x128xf32, #tpu.memory_space<vmem>>, vector<1x128xf32>,
    %8 = arith.mulf %2, %2 : vector<128x128xf32>
    %cst_8 = arith.constant dense<0.000000e+00> : vector<128xf32>
    %9 = vector.multi_reduction <add>, %8, %cst_8 [0] : vector<128x128xf32> to vector<128xf32>
    %10 = vector.shape_cast %9 : vector<128xf32> to vector<1x128xf32>
    %c1 = arith.constant 1 : index
    %c0_9 = arith.constant 0 : index
    %11 = vector.load %arg4[%c1, %c0_9] : memref<8x128xf32, #tpu.memory_space<vmem>>, vector<1x128xf32>
    tpu.vector_store %arg4[%c1, %c0_9], %10 {strides = array<i32>} : memref<8x128xf32, #tpu.memory_space<vmem>>, vector<1x128xf32>,
    %cst_10 = arith.constant 0.000000e+00 : f32
    %12 = vector.broadcast %cst_10 : f32 to vector<6x128xf32>
    %c2 = arith.constant 2 : index
    %c0_11 = arith.constant 0 : index
    %13 = vector.load %arg4[%c2, %c0_11] : memref<8x128xf32, #tpu.memory_space<vmem>>, vector<6x128xf32>
    tpu.vector_store %arg4[%c2, %c0_11], %12 {strides = array<i32>} : memref<8x128xf32, #tpu.memory_space<vmem>>, vector<6x128xf32>,
    return
  }
  func.func @transform_0(%arg0: i32) -> (i32, i32) {
    %c0_i32 = arith.constant 0 : i32
    %c0_i32_0 = arith.constant 0 : i32
    return %arg0, %c0_i32 : i32, i32
  }
  func.func @transform_1(%arg0: i32) -> (i32, i32) {
    %c0_i32 = arith.constant 0 : i32
    %c0_i32_0 = arith.constant 0 : i32
    %c0_i32_1 = arith.constant 0 : i32
    return %c0_i32, %c0_i32_0 : i32, i32
  }
  func.func @transform_2(%arg0: i32) -> (i32, i32) {
    %c0_i32 = arith.constant 0 : i32
    %c0_i32_0 = arith.constant 0 : i32
    return %arg0, %c0_i32 : i32, i32
  }
  func.func @transform_3(%arg0: i32) -> (i32, i32) {
    %c0_i32 = arith.constant 0 : i32
    %c0_i32_0 = arith.constant 0 : i32
    return %arg0, %c0_i32 : i32, i32
  }
}

module attributes {stable_mosaic.version = 11 : i64} {
  func.func @_bn_apply_kernel(%arg0: i32, %arg1: memref<128x128xbf16, #tpu.memory_space<vmem>>, %arg2: memref<8x128xf32, #tpu.memory_space<vmem>>, %arg3: memref<128x128xbf16, #tpu.memory_space<vmem>>) attributes {dimension_semantics = [#tpu.dimension_semantics<parallel>], iteration_bounds = array<i64: 1>, scalar_prefetch = 0 : i64, scratch_operands = 0 : i64, tpu.core_type = #tpu.core_type<tc>, window_params = [{transform_indices = @transform_0, window_bounds = array<i64: 128, 128>}, {pipeline_mode = #tpu.pipeline_mode<synchronous>, transform_indices = @transform_1, window_bounds = array<i64: 8, 128>}, {transform_indices = @transform_2, window_bounds = array<i64: 128, 128>}]} {
    %c0 = arith.constant 0 : index
    %c0_0 = arith.constant 0 : index
    %0 = vector.load %arg1[%c0, %c0_0] : memref<128x128xbf16, #tpu.memory_space<vmem>>, vector<128x128xbf16>
    %1 = arith.extf %0 : vector<128x128xbf16> to vector<128x128xf32>
    %c0_1 = arith.constant 0 : index
    %c0_2 = arith.constant 0 : index
    %2 = vector.load %arg2[%c0_1, %c0_2] : memref<8x128xf32, #tpu.memory_space<vmem>>, vector<1x128xf32>
    %3 = vector.broadcast %2 : vector<1x128xf32> to vector<128x128xf32>
    %4 = arith.mulf %1, %3 : vector<128x128xf32>
    %c1 = arith.constant 1 : index
    %c0_3 = arith.constant 0 : index
    %5 = vector.load %arg2[%c1, %c0_3] : memref<8x128xf32, #tpu.memory_space<vmem>>, vector<1x128xf32>
    %6 = vector.broadcast %5 : vector<1x128xf32> to vector<128x128xf32>
    %7 = arith.addf %4, %6 : vector<128x128xf32>
    %cst = arith.constant 0.000000e+00 : f32
    %8 = vector.broadcast %cst : f32 to vector<128x128xf32>
    %9 = arith.maximumf %7, %8 : vector<128x128xf32>
    %10 = arith.truncf %9 : vector<128x128xf32> to vector<128x128xbf16>
    %c0_4 = arith.constant 0 : index
    %c0_5 = arith.constant 0 : index
    %11 = vector.load %arg3[%c0_4, %c0_5] : memref<128x128xbf16, #tpu.memory_space<vmem>>, vector<128x128xbf16>
    tpu.vector_store %arg3[%c0_4, %c0_5], %10 {strides = array<i32>} : memref<128x128xbf16, #tpu.memory_space<vmem>>, vector<128x128xbf16>,
    return
  }
  func.func @transform_0(%arg0: i32) -> (i32, i32) {
    %c0_i32 = arith.constant 0 : i32
    %c0_i32_0 = arith.constant 0 : i32
    return %arg0, %c0_i32 : i32, i32
  }
  func.func @transform_1(%arg0: i32) -> (i32, i32) {
    %c0_i32 = arith.constant 0 : i32
    %c0_i32_0 = arith.constant 0 : i32
    %c0_i32_1 = arith.constant 0 : i32
    return %c0_i32, %c0_i32_0 : i32, i32
  }
  func.func @transform_2(%arg0: i32) -> (i32, i32) {
    %c0_i32 = arith.constant 0 : i32
    %c0_i32_0 = arith.constant 0 : i32
    return %arg0, %c0_i32 : i32, i32
  }
}

module attributes {stable_mosaic.version = 11 : i64} {
  func.func @_bn_apply_kernel(%arg0: i32, %arg1: memref<128x128xbf16, #tpu.memory_space<vmem>>, %arg2: memref<8x128xf32, #tpu.memory_space<vmem>>, %arg3: memref<128x128xbf16, #tpu.memory_space<vmem>>, %arg4: memref<8x128xf32, #tpu.memory_space<vmem>>, %arg5: memref<128x128xbf16, #tpu.memory_space<vmem>>) attributes {dimension_semantics = [#tpu.dimension_semantics<parallel>], iteration_bounds = array<i64: 1>, scalar_prefetch = 0 : i64, scratch_operands = 0 : i64, tpu.core_type = #tpu.core_type<tc>, window_params = [{transform_indices = @transform_0, window_bounds = array<i64: 128, 128>}, {pipeline_mode = #tpu.pipeline_mode<synchronous>, transform_indices = @transform_1, window_bounds = array<i64: 8, 128>}, {transform_indices = @transform_2, window_bounds = array<i64: 128, 128>}, {pipeline_mode = #tpu.pipeline_mode<synchronous>, transform_indices = @transform_3, window_bounds = array<i64: 8, 128>}, {transform_indices = @transform_4, window_bounds = array<i64: 128, 128>}]} {
    %c0 = arith.constant 0 : index
    %c0_0 = arith.constant 0 : index
    %0 = vector.load %arg1[%c0, %c0_0] : memref<128x128xbf16, #tpu.memory_space<vmem>>, vector<128x128xbf16>
    %1 = arith.extf %0 : vector<128x128xbf16> to vector<128x128xf32>
    %c0_1 = arith.constant 0 : index
    %c0_2 = arith.constant 0 : index
    %2 = vector.load %arg2[%c0_1, %c0_2] : memref<8x128xf32, #tpu.memory_space<vmem>>, vector<1x128xf32>
    %3 = vector.broadcast %2 : vector<1x128xf32> to vector<128x128xf32>
    %4 = arith.mulf %1, %3 : vector<128x128xf32>
    %c1 = arith.constant 1 : index
    %c0_3 = arith.constant 0 : index
    %5 = vector.load %arg2[%c1, %c0_3] : memref<8x128xf32, #tpu.memory_space<vmem>>, vector<1x128xf32>
    %6 = vector.broadcast %5 : vector<1x128xf32> to vector<128x128xf32>
    %7 = arith.addf %4, %6 : vector<128x128xf32>
    %c0_4 = arith.constant 0 : index
    %c0_5 = arith.constant 0 : index
    %8 = vector.load %arg3[%c0_4, %c0_5] : memref<128x128xbf16, #tpu.memory_space<vmem>>, vector<128x128xbf16>
    %9 = arith.extf %8 : vector<128x128xbf16> to vector<128x128xf32>
    %c0_6 = arith.constant 0 : index
    %c0_7 = arith.constant 0 : index
    %10 = vector.load %arg4[%c0_6, %c0_7] : memref<8x128xf32, #tpu.memory_space<vmem>>, vector<1x128xf32>
    %11 = vector.broadcast %10 : vector<1x128xf32> to vector<128x128xf32>
    %12 = arith.mulf %9, %11 : vector<128x128xf32>
    %c1_8 = arith.constant 1 : index
    %c0_9 = arith.constant 0 : index
    %13 = vector.load %arg4[%c1_8, %c0_9] : memref<8x128xf32, #tpu.memory_space<vmem>>, vector<1x128xf32>
    %14 = vector.broadcast %13 : vector<1x128xf32> to vector<128x128xf32>
    %15 = arith.addf %12, %14 : vector<128x128xf32>
    %16 = arith.addf %7, %15 : vector<128x128xf32>
    %cst = arith.constant 0.000000e+00 : f32
    %17 = vector.broadcast %cst : f32 to vector<128x128xf32>
    %18 = arith.maximumf %16, %17 : vector<128x128xf32>
    %19 = arith.truncf %18 : vector<128x128xf32> to vector<128x128xbf16>
    %c0_10 = arith.constant 0 : index
    %c0_11 = arith.constant 0 : index
    %20 = vector.load %arg5[%c0_10, %c0_11] : memref<128x128xbf16, #tpu.memory_space<vmem>>, vector<128x128xbf16>
    tpu.vector_store %arg5[%c0_10, %c0_11], %19 {strides = array<i32>} : memref<128x128xbf16, #tpu.memory_space<vmem>>, vector<128x128xbf16>,
    return
  }
  func.func @transform_0(%arg0: i32) -> (i32, i32) {
    %c0_i32 = arith.constant 0 : i32
    %c0_i32_0 = arith.constant 0 : i32
    return %arg0, %c0_i32 : i32, i32
  }
  func.func @transform_1(%arg0: i32) -> (i32, i32) {
    %c0_i32 = arith.constant 0 : i32
    %c0_i32_0 = arith.constant 0 : i32
    %c0_i32_1 = arith.constant 0 : i32
    return %c0_i32, %c0_i32_0 : i32, i32
  }
  func.func @transform_2(%arg0: i32) -> (i32, i32) {
    %c0_i32 = arith.constant 0 : i32
    %c0_i32_0 = arith.constant 0 : i32
    return %arg0, %c0_i32 : i32, i32
  }
  func.func @transform_3(%arg0: i32) -> (i32, i32) {
    %c0_i32 = arith.constant 0 : i32
    %c0_i32_0 = arith.constant 0 : i32
    %c0_i32_1 = arith.constant 0 : i32
    return %c0_i32, %c0_i32_0 : i32, i32
  }
  func.func @transform_4(%arg0: i32) -> (i32, i32) {
    %c0_i32 = arith.constant 0 : i32
    %c0_i32_0 = arith.constant 0 : i32
    return %arg0, %c0_i32 : i32, i32
  }
}

module attributes {stable_mosaic.version = 11 : i64} {
  func.func @_conv_stats_kernel(%arg0: i32, %arg1: memref<128x128xbf16, #tpu.memory_space<vmem>>, %arg2: memref<128x128xbf16, #tpu.memory_space<vmem>>, %arg3: memref<128x128xbf16, #tpu.memory_space<vmem>>, %arg4: memref<128x128xbf16, #tpu.memory_space<vmem>>, %arg5: memref<128x128xbf16, #tpu.memory_space<vmem>>, %arg6: memref<8x128xf32, #tpu.memory_space<vmem>>, %arg7: memref<128x128xbf16, #tpu.memory_space<vmem>>, %arg8: memref<8x128xf32, #tpu.memory_space<vmem>>) attributes {dimension_semantics = [#tpu.dimension_semantics<parallel>], iteration_bounds = array<i64: 1>, scalar_prefetch = 0 : i64, scratch_operands = 0 : i64, tpu.core_type = #tpu.core_type<tc>, window_params = [{transform_indices = @transform_0, window_bounds = array<i64: 128, 128>}, {pipeline_mode = #tpu.pipeline_mode<synchronous>, transform_indices = @transform_1, window_bounds = array<i64: 128, 128>}, {transform_indices = @transform_2, window_bounds = array<i64: 128, 128>}, {pipeline_mode = #tpu.pipeline_mode<synchronous>, transform_indices = @transform_3, window_bounds = array<i64: 128, 128>}, {transform_indices = @transform_4, window_bounds = array<i64: 128, 128>}, {transform_indices = @transform_5, window_bounds = array<i64: 8, 128>}, {transform_indices = @transform_6, window_bounds = array<i64: 128, 128>}, {transform_indices = @transform_7, window_bounds = array<i64: 8, 128>}]} {
    %c0 = arith.constant 0 : index
    %c0_0 = arith.constant 0 : index
    %0 = vector.load %arg1[%c0, %c0_0] : memref<128x128xbf16, #tpu.memory_space<vmem>>, vector<128x128xbf16>
    %c0_1 = arith.constant 0 : index
    %c0_2 = arith.constant 0 : index
    %1 = vector.load %arg2[%c0_1, %c0_2] : memref<128x128xbf16, #tpu.memory_space<vmem>>, vector<128x128xbf16>
    %cst = arith.constant dense<0.000000e+00> : vector<128x128xf32>
    %2 = tpu.matmul %0, %1, %cst {dimension_numbers = #tpu.dot_dimension_numbers<[1], [0], [0], [1], [0, 0, 1, 1], [], []>} : vector<128x128xbf16>, vector<128x128xbf16>, vector<128x128xf32> -> vector<128x128xf32>
    %3 = arith.truncf %2 : vector<128x128xf32> to vector<128x128xbf16>
    %c0_3 = arith.constant 0 : index
    %c0_4 = arith.constant 0 : index
    %4 = vector.load %arg5[%c0_3, %c0_4] : memref<128x128xbf16, #tpu.memory_space<vmem>>, vector<128x128xbf16>
    tpu.vector_store %arg5[%c0_3, %c0_4], %3 {strides = array<i32>} : memref<128x128xbf16, #tpu.memory_space<vmem>>, vector<128x128xbf16>,
    %cst_5 = arith.constant dense<0.000000e+00> : vector<128xf32>
    %5 = vector.multi_reduction <add>, %2, %cst_5 [0] : vector<128x128xf32> to vector<128xf32>
    %6 = vector.shape_cast %5 : vector<128xf32> to vector<1x128xf32>
    %c0_6 = arith.constant 0 : index
    %c0_7 = arith.constant 0 : index
    %7 = vector.load %arg6[%c0_6, %c0_7] : memref<8x128xf32, #tpu.memory_space<vmem>>, vector<1x128xf32>
    tpu.vector_store %arg6[%c0_6, %c0_7], %6 {strides = array<i32>} : memref<8x128xf32, #tpu.memory_space<vmem>>, vector<1x128xf32>,
    %8 = arith.mulf %2, %2 : vector<128x128xf32>
    %cst_8 = arith.constant dense<0.000000e+00> : vector<128xf32>
    %9 = vector.multi_reduction <add>, %8, %cst_8 [0] : vector<128x128xf32> to vector<128xf32>
    %10 = vector.shape_cast %9 : vector<128xf32> to vector<1x128xf32>
    %c1 = arith.constant 1 : index
    %c0_9 = arith.constant 0 : index
    %11 = vector.load %arg6[%c1, %c0_9] : memref<8x128xf32, #tpu.memory_space<vmem>>, vector<1x128xf32>
    tpu.vector_store %arg6[%c1, %c0_9], %10 {strides = array<i32>} : memref<8x128xf32, #tpu.memory_space<vmem>>, vector<1x128xf32>,
    %cst_10 = arith.constant 0.000000e+00 : f32
    %12 = vector.broadcast %cst_10 : f32 to vector<6x128xf32>
    %c2 = arith.constant 2 : index
    %c0_11 = arith.constant 0 : index
    %13 = vector.load %arg6[%c2, %c0_11] : memref<8x128xf32, #tpu.memory_space<vmem>>, vector<6x128xf32>
    tpu.vector_store %arg6[%c2, %c0_11], %12 {strides = array<i32>} : memref<8x128xf32, #tpu.memory_space<vmem>>, vector<6x128xf32>,
    %c0_12 = arith.constant 0 : index
    %c0_13 = arith.constant 0 : index
    %14 = vector.load %arg3[%c0_12, %c0_13] : memref<128x128xbf16, #tpu.memory_space<vmem>>, vector<128x128xbf16>
    %c0_14 = arith.constant 0 : index
    %c0_15 = arith.constant 0 : index
    %15 = vector.load %arg4[%c0_14, %c0_15] : memref<128x128xbf16, #tpu.memory_space<vmem>>, vector<128x128xbf16>
    %cst_16 = arith.constant dense<0.000000e+00> : vector<128x128xf32>
    %16 = tpu.matmul %14, %15, %cst_16 {dimension_numbers = #tpu.dot_dimension_numbers<[1], [0], [0], [1], [0, 0, 1, 1], [], []>} : vector<128x128xbf16>, vector<128x128xbf16>, vector<128x128xf32> -> vector<128x128xf32>
    %17 = arith.truncf %16 : vector<128x128xf32> to vector<128x128xbf16>
    %c0_17 = arith.constant 0 : index
    %c0_18 = arith.constant 0 : index
    %18 = vector.load %arg7[%c0_17, %c0_18] : memref<128x128xbf16, #tpu.memory_space<vmem>>, vector<128x128xbf16>
    tpu.vector_store %arg7[%c0_17, %c0_18], %17 {strides = array<i32>} : memref<128x128xbf16, #tpu.memory_space<vmem>>, vector<128x128xbf16>,
    %cst_19 = arith.constant dense<0.000000e+00> : vector<128xf32>
    %19 = vector.multi_reduction <add>, %16, %cst_19 [0] : vector<128x128xf32> to vector<128xf32>
    %20 = vector.shape_cast %19 : vector<128xf32> to vector<1x128xf32>
    %c0_20 = arith.constant 0 : index
    %c0_21 = arith.constant 0 : index
    %21 = vector.load %arg8[%c0_20, %c0_21] : memref<8x128xf32, #tpu.memory_space<vmem>>, vector<1x128xf32>
    tpu.vector_store %arg8[%c0_20, %c0_21], %20 {strides = array<i32>} : memref<8x128xf32, #tpu.memory_space<vmem>>, vector<1x128xf32>,
    %22 = arith.mulf %16, %16 : vector<128x128xf32>
    %cst_22 = arith.constant dense<0.000000e+00> : vector<128xf32>
    %23 = vector.multi_reduction <add>, %22, %cst_22 [0] : vector<128x128xf32> to vector<128xf32>
    %24 = vector.shape_cast %23 : vector<128xf32> to vector<1x128xf32>
    %c1_23 = arith.constant 1 : index
    %c0_24 = arith.constant 0 : index
    %25 = vector.load %arg8[%c1_23, %c0_24] : memref<8x128xf32, #tpu.memory_space<vmem>>, vector<1x128xf32>
    tpu.vector_store %arg8[%c1_23, %c0_24], %24 {strides = array<i32>} : memref<8x128xf32, #tpu.memory_space<vmem>>, vector<1x128xf32>,
    %cst_25 = arith.constant 0.000000e+00 : f32
    %26 = vector.broadcast %cst_25 : f32 to vector<6x128xf32>
    %c2_26 = arith.constant 2 : index
    %c0_27 = arith.constant 0 : index
    %27 = vector.load %arg8[%c2_26, %c0_27] : memref<8x128xf32, #tpu.memory_space<vmem>>, vector<6x128xf32>
    tpu.vector_store %arg8[%c2_26, %c0_27], %26 {strides = array<i32>} : memref<8x128xf32, #tpu.memory_space<vmem>>, vector<6x128xf32>,
    return
  }
  func.func @transform_0(%arg0: i32) -> (i32, i32) {
    %c0_i32 = arith.constant 0 : i32
    %c0_i32_0 = arith.constant 0 : i32
    return %arg0, %c0_i32 : i32, i32
  }
  func.func @transform_1(%arg0: i32) -> (i32, i32) {
    %c0_i32 = arith.constant 0 : i32
    %c0_i32_0 = arith.constant 0 : i32
    %c0_i32_1 = arith.constant 0 : i32
    return %c0_i32, %c0_i32_0 : i32, i32
  }
  func.func @transform_2(%arg0: i32) -> (i32, i32) {
    %c0_i32 = arith.constant 0 : i32
    %c0_i32_0 = arith.constant 0 : i32
    return %arg0, %c0_i32 : i32, i32
  }
  func.func @transform_3(%arg0: i32) -> (i32, i32) {
    %c0_i32 = arith.constant 0 : i32
    %c0_i32_0 = arith.constant 0 : i32
    %c0_i32_1 = arith.constant 0 : i32
    return %c0_i32, %c0_i32_0 : i32, i32
  }
  func.func @transform_4(%arg0: i32) -> (i32, i32) {
    %c0_i32 = arith.constant 0 : i32
    %c0_i32_0 = arith.constant 0 : i32
    return %arg0, %c0_i32 : i32, i32
  }
  func.func @transform_5(%arg0: i32) -> (i32, i32) {
    %c0_i32 = arith.constant 0 : i32
    %c0_i32_0 = arith.constant 0 : i32
    return %arg0, %c0_i32 : i32, i32
  }
  func.func @transform_6(%arg0: i32) -> (i32, i32) {
    %c0_i32 = arith.constant 0 : i32
    %c0_i32_0 = arith.constant 0 : i32
    return %arg0, %c0_i32 : i32, i32
  }
  func.func @transform_7(%arg0: i32) -> (i32, i32) {
    %c0_i32 = arith.constant 0 : i32
    %c0_i32_0 = arith.constant 0 : i32
    return %arg0, %c0_i32 : i32, i32
  }
}

</mosaic_0001>

<bundles_post_ra>
// kernel: block_forward.5
= control target key start
LH: loop header
LB: loop body
LE: loop exit
PB: predicated region body
PF: predicated region fallthrough
CT: control target
= control target key end

     0   :  { %s410_s0 = inlined_call_operand.vmem [shape: bf16[128,128], index: 0, kind: input, shape index: {}]   ;;  %s411_s1 = inlined_call_operand.vmem [shape: f32[8,128], index: 1, kind: input, shape index: {}]   ;;  %s412_s2 = inlined_call_operand.vmem [shape: bf16[128,128], index: 2, kind: output, shape index: {}]  }
   0x1   :  { %v220_v0 = vld [vmem:[%s410_s0] sm:$0xff]   ;;  %v291_v4 = vld [vmem:[%s410_s0 + $0x8] sm:$0xff]   ;;  %v292_v5 = vld [vmem:[%s410_s0 + $0x10] sm:$0xff]  }
   0x2   :  { %v326_v1 = vld [vmem:[%s411_s1] ss:$0 sm:$0xff]  ;;  %v221_v2 = vunpack.c.l.bf16 %v220_v0  ;;  %v222_v3 = vunpack.c.h.bf16 %v220_v0  ;;  %v293_v6 = vld [vmem:[%s410_s0 + $0x18] sm:$0xff]   ;;  %v340_v7 = vld [vmem:[%s411_s1 + $0x1] ss:$0 sm:$0xff]  ;;  %v225_v8 = vunpack.c.l.bf16 %v291_v4  ;;  %v226_v9 = vunpack.c.h.bf16 %v291_v4 }
   0x3   :  { %v229_v10 = vunpack.c.l.bf16 %v292_v5  ;;  %v230_v11 = vunpack.c.h.bf16 %v292_v5  ;;  %v233_v14 = vunpack.c.l.bf16 %v293_v6  ;;  %v234_v15 = vunpack.c.h.bf16 %v293_v6  ;;  %v294_v28 = vld [vmem:[%s410_s0 + $0x20] sm:$0xff]   ;;  %v295_v33 = vld [vmem:[%s410_s0 + $0x28] sm:$0xff]   ;;  %v296_v38 = vld [vmem:[%s410_s0 + $0x30] sm:$0xff]  }
   0x4   :  { %v48_v12 = vmul.f32 %v221_v2, %v326_v1  ;;  %v49_v13 = vmul.f32 %v222_v3, %v326_v1  ;;  %v50_v16 = vmul.f32 %v225_v8, %v326_v1  ;;  %v51_v17 = vmul.f32 %v226_v9, %v326_v1  ;;  %v297_v43 = vld [vmem:[%s410_s0 + $0x38] sm:$0xff]  }
   0x5   :  { %v52_v18 = vmul.f32 %v229_v10, %v326_v1  ;;  %v53_v19 = vmul.f32 %v230_v11, %v326_v1  ;;  %v54_v22 = vmul.f32 %v233_v14, %v326_v1  ;;  %v55_v23 = vmul.f32 %v234_v15, %v326_v1 }
   0x6   :  { %v69_v20 = vadd.f32 %v340_v7, %v48_v12  ;;  %v70_v21 = vadd.f32 %v340_v7, %v49_v13  ;;  %v71_v24 = vadd.f32 %v340_v7, %v50_v16  ;;  %v72_v25 = vadd.f32 %v340_v7, %v51_v17 }
   0x7   :  { %v73_v26 = vadd.f32 %v340_v7, %v52_v18  ;;  %v74_v27 = vadd.f32 %v340_v7, %v53_v19  ;;  %v75_v31 = vadd.f32 %v340_v7, %v54_v22  ;;  %v76_v32 = vadd.f32 %v340_v7, %v55_v23 }
   0x8   :  { %v85_v29 = vmax.f32 %v69_v20, 0.0  ;;  %v86_v30 = vmax.f32 %v70_v21, 0.0  ;;  %v87_v34 = vmax.f32 %v71_v24, 0.0  ;;  %v88_v35 = vmax.f32 %v72_v25, 0.0 }
   0x9   :  { %v89_v36 = vmax.f32 %v73_v26, 0.0  ;;  %v90_v37 = vmax.f32 %v74_v27, 0.0  ;;  %v91_v40 = vmax.f32 %v75_v31, 0.0  ;;  %v92_v41 = vmax.f32 %v76_v32, 0.0 }
   0xa   :  { %v254_v39 = vpack.c.bf16 %v86_v30, %v85_v29  ;;  %v237_v42 = vunpack.c.l.bf16 %v294_v28  ;;  %v259_v44 = vpack.c.bf16 %v88_v35, %v87_v34  ;;  %v238_v46 = vunpack.c.h.bf16 %v294_v28 }
   0xb   :  { %v264_v45 = vpack.c.bf16 %v90_v37, %v89_v36  ;;  %v241_v47 = vunpack.c.l.bf16 %v295_v33  ;;  %v269_v48 = vpack.c.bf16 %v92_v41, %v91_v40  ;;  %v242_v50 = vunpack.c.h.bf16 %v295_v33 }
   0xc   :  { %255 = vst [vmem:[%s412_s2] sm:$0xff] %v254_v39   ;;  %v56_v49 = vmul.f32 %v237_v42, %v326_v1  ;;  %v245_v51 = vunpack.c.l.bf16 %v296_v38  ;;  %298 = vst [vmem:[%s412_s2 + $0x8] sm:$0xff] %v259_v44   ;;  %v57_v52 = vmul.f32 %v238_v46, %v326_v1  ;;  %v246_v54 = vunpack.c.h.bf16 %v296_v38 }
   0xd   :  { %299 = vst [vmem:[%s412_s2 + $0x10] sm:$0xff] %v264_v45   ;;  %v58_v53 = vmul.f32 %v241_v47, %v326_v1  ;;  %v249_v55 = vunpack.c.l.bf16 %v297_v43  ;;  %300 = vst [vmem:[%s412_s2 + $0x18] sm:$0xff] %v269_v48   ;;  %v59_v57 = vmul.f32 %v242_v50, %v326_v1  ;;  %v250_v59 = vunpack.c.h.bf16 %v297_v43 }
   0xe   :  { %v77_v56 = vadd.f32 %v340_v7, %v56_v49  ;;  %v60_v58 = vmul.f32 %v245_v51, %v326_v1  ;;  %v78_v60 = vadd.f32 %v340_v7, %v57_v52  ;;  %v61_v62 = vmul.f32 %v246_v54, %v326_v1 }
   0xf   :  { %v79_v61 = vadd.f32 %v340_v7, %v58_v53  ;;  %v62_v63 = vmul.f32 %v249_v55, %v326_v1  ;;  %v80_v2 = vadd.f32 %v340_v7, %v59_v57  ;;  %v63_v4 = vmul.f32 %v250_v59, %v326_v1 }
  0x10   :  { %v93_v0 = vmax.f32 %v77_v56, 0.0  ;;  %v81_v3 = vadd.f32 %v340_v7, %v60_v58  ;;  %v94_v5 = vmax.f32 %v78_v60, 0.0  ;;  %v82_v8 = vadd.f32 %v340_v7, %v61_v62 }
  0x11   :  { %v95_v6 = vmax.f32 %v79_v61, 0.0  ;;  %v83_v9 = vadd.f32 %v340_v7, %v62_v63  ;;  %v96_v10 = vmax.f32 %v80_v2, 0.0  ;;  %v84_v12 = vadd.f32 %v340_v7, %v63_v4 }
  0x12   :  { %v97_v11 = vmax.f32 %v81_v3, 0.0  ;;  %v274_v13 = vpack.c.bf16 %v94_v5, %v93_v0  ;;  %v98_v14 = vmax.f32 %v82_v8, 0.0 }
  0x13   :  { %v99_v15 = vmax.f32 %v83_v9, 0.0  ;;  %v279_v16 = vpack.c.bf16 %v96_v10, %v95_v6  ;;  %v100_v17 = vmax.f32 %v84_v12, 0.0 }
  0x14   :  { %301 = vst [vmem:[%s412_s2 + $0x20] sm:$0xff] %v274_v13   ;;  %v284_v1 = vpack.c.bf16 %v98_v14, %v97_v11 }
  0x15   :  { %302 = vst [vmem:[%s412_s2 + $0x28] sm:$0xff] %v279_v16   ;;  %v289_v18 = vpack.c.bf16 %v100_v17, %v99_v15 }
  0x16   :  { %303 = vst [vmem:[%s412_s2 + $0x30] sm:$0xff] %v284_v1  }
  0x17   :  { %304 = vst [vmem:[%s412_s2 + $0x38] sm:$0xff] %v289_v18  }

// kernel: block_forward.4
= control target key start
LH: loop header
LB: loop body
LE: loop exit
PB: predicated region body
PF: predicated region fallthrough
CT: control target
= control target key end

     0   :  { %v564_v16 = vmov 0.0   ;;  %s666_s1 = inlined_call_operand.vmem [shape: bf16[128,128], index: 1, kind: input, shape index: {}]   ;;  %s667_s0 = inlined_call_operand.vmem [shape: bf16[128,128], index: 0, kind: input, shape index: {}]   ;;  %s668_s3 = inlined_call_operand.vmem [shape: f32[8,128], index: 3, kind: output, shape index: {1}]   ;;  %s669_s2 = inlined_call_operand.vmem [shape: bf16[128,128], index: 2, kind: output, shape index: {0}]  }
   0x1   :  { %v548_v0 = vld [vmem:[%s666_s1 + $0x38] sm:$0xff]   ;;  %v549_v1 = vld [vmem:[%s666_s1 + $0x30] sm:$0xff]   ;;  %v550_v2 = vld [vmem:[%s666_s1 + $0x28] sm:$0xff]   ;;  %379 = vst [vmem:[%s668_s3 + $0x2] sm:$0x3f] %v564_v16 }
   0x2   :  { %499 = vmatprep.subr.bf16.mxu0 %v548_v0  ;;  %531 = vmatprep.subr.bf16.mxu1 %v548_v0  ;;  %v551_v3 = vld [vmem:[%s666_s1 + $0x20] sm:$0xff]   ;;  %v552_v5 = vld [vmem:[%s666_s1 + $0x18] sm:$0xff]   ;;  %v553_v7 = vld [vmem:[%s666_s1 + $0x10] sm:$0xff]  }
   0x3   :  { %500 = vmatpush3.bf16.msra.mxu0 %v548_v0  ;;  %539 = vmatpush3.bf16.msra.mxu1 %v548_v0  ;;  %v556_v4 = vld [vmem:[%s667_s0] sm:$0xff]   ;;  %v554_v8 = vld [vmem:[%s666_s1 + $0x8] sm:$0xff]   ;;  %v558_v12 = vld [vmem:[%s667_s0 + $0x10] sm:$0xff]  }
   0x4   :  { %501 = vmatprep.subr.bf16.mxu0 %v549_v1  ;;  %532 = vmatprep.subr.bf16.mxu1 %v549_v1  ;;  %v560_v6 = vld [vmem:[%s667_s0 + $0x20] sm:$0xff]   ;;  %v557_v10 = vld [vmem:[%s667_s0 + $0x8] sm:$0xff]   ;;  %v562_v13 = vld [vmem:[%s667_s0 + $0x30] sm:$0xff]  }
   0x5   :  { %515 = vmatprep.mubr.bf16.mxu0 %v556_v4  ;;  %523 = vmatprep.mubr.bf16.mxu1 %v560_v6  ;;  %v555_v9 = vld [vmem:[%s666_s1] sm:$0xff]   ;;  %v561_v11 = vld [vmem:[%s667_s0 + $0x28] sm:$0xff]   ;;  %v559_v14 = vld [vmem:[%s667_s0 + $0x18] sm:$0xff]  }
   0x6   :  { %v563_v15 = vld [vmem:[%s667_s0 + $0x38] sm:$0xff]  }
   0x7   :  { %502 = vmatpush3.bf16.msra.mxu0 %v549_v1  ;;  %540 = vmatpush3.bf16.msra.mxu1 %v549_v1 }
   0x8   :  { %503 = vmatprep.subr.bf16.mxu0 %v550_v2  ;;  %533 = vmatprep.subr.bf16.mxu1 %v550_v2 }
   0xb   :  { %504 = vmatpush3.bf16.msra.mxu0 %v550_v2  ;;  %541 = vmatpush3.bf16.msra.mxu1 %v550_v2 }
   0xc   :  { %505 = vmatprep.subr.bf16.mxu0 %v551_v3  ;;  %534 = vmatprep.subr.bf16.mxu1 %v551_v3 }
   0xf   :  { %506 = vmatpush3.bf16.msra.mxu0 %v551_v3  ;;  %542 = vmatpush3.bf16.msra.mxu1 %v551_v3 }
  0x10   :  { %507 = vmatprep.subr.bf16.mxu0 %v552_v5  ;;  %535 = vmatprep.subr.bf16.mxu1 %v552_v5 }
  0x13   :  { %508 = vmatpush3.bf16.msra.mxu0 %v552_v5  ;;  %543 = vmatpush3.bf16.msra.mxu1 %v552_v5 }
  0x14   :  { %509 = vmatprep.subr.bf16.mxu0 %v553_v7  ;;  %536 = vmatprep.subr.bf16.mxu1 %v553_v7 }
  0x17   :  { %510 = vmatpush3.bf16.msra.mxu0 %v553_v7  ;;  %544 = vmatpush3.bf16.msra.mxu1 %v553_v7 }
  0x18   :  { %511 = vmatprep.subr.bf16.mxu0 %v554_v8  ;;  %537 = vmatprep.subr.bf16.mxu1 %v554_v8 }
  0x1b   :  { %512 = vmatpush3.bf16.msra.mxu0 %v554_v8  ;;  %545 = vmatpush3.bf16.msra.mxu1 %v554_v8 }
  0x1c   :  { %513 = vmatprep.subr.bf16.mxu0 %v555_v9  ;;  %538 = vmatprep.subr.bf16.mxu1 %v555_v9 }
  0x1f   :  { %514 = vmatpush3.bf16.msra.mxu0 %v555_v9  ;;  %546 = vmatpush3.bf16.msra.mxu1 %v555_v9 }
  0x22   :  { %516 = vmatmul.mubr.bf16.vlgmr.msra.gmra.mxu0 %v557_v10  ;;  %524 = vmatmul.mubr.bf16.vlgmr.msra.gmra.mxu1 %v561_v11 }
  0x23   :  { %519 = vmatprep.mubr.bf16.mxu0 %v558_v12  ;;  %527 = vmatprep.mubr.bf16.mxu1 %v562_v13 }
  0x2a   :  { %520 = vmatmul.mubr.bf16.gmra.mxu0 %v559_v14  ;;  %528 = vmatmul.mubr.bf16.gmra.mxu1 %v563_v15 }
  0xe2   :  { %v517_v17 = vpop.f32.mrf.mxu0  ;;  %v525_v18 = vpop.f32.mrf.mxu1 }
  0xe3   :  { %v343_v34 = vmul.f32 %v517_v17, %v517_v17  ;;  %v351_v4 = vmul.f32 %v525_v18, %v525_v18 }
  0xe4   :  { %v176_v19 = vpop.f32.mrf.mxu0  ;;  %v208_v20 = vpop.f32.mrf.mxu1 }
  0xe5   :  { %v341_v25 = vmul.f32 %v176_v19, %v176_v19  ;;  %v349_v62 = vmul.f32 %v208_v20, %v208_v20 }
  0xe6   :  { %v518_v21 = vpop.f32.mrf.mxu0  ;;  %v526_v22 = vpop.f32.mrf.mxu1 }
  0xe7   :  { %v444_v23 = vpack.c.bf16 %v518_v21, %v517_v17  ;;  %v464_v24 = vpack.c.bf16 %v526_v22, %v525_v18  ;;  %v344_v39 = vmul.f32 %v518_v21, %v518_v21  ;;  %v352_v7 = vmul.f32 %v526_v22, %v526_v22 }
  0xe8   :  { %v179_v26 = vpop.f32.mrf.mxu0  ;;  %v211_v27 = vpop.f32.mrf.mxu1 }
  0xe9   :  { %476 = vst [vmem:[%s669_s2 + $0x8] sm:$0xff] %v444_v23   ;;  %v439_v28 = vpack.c.bf16 %v179_v26, %v176_v19  ;;  %v319_v29 = vadd.f32 %v179_v26, %v176_v19  ;;  %v342_v30 = vmul.f32 %v179_v26, %v179_v26  ;;  %480 = vst [vmem:[%s669_s2 + $0x28] sm:$0xff] %v464_v24  }
  0xea   :  { %v459_v31 = vpack.c.bf16 %v211_v27, %v208_v20  ;;  %v521_v32 = vpop.f32.mrf.mxu0  ;;  %v529_v33 = vpop.f32.mrf.mxu1  ;;  %v350_v2 = vmul.f32 %v211_v27, %v211_v27 }
  0xeb   :  { %440 = vst [vmem:[%s669_s2] sm:$0xff] %v439_v28   ;;  %v320_v35 = vadd.f32 %v517_v17, %v319_v29  ;;  %v357_v36 = vadd.f32 %v342_v30, %v341_v25  ;;  %v347_v56 = vmul.f32 %v521_v32, %v521_v32  ;;  %v355_v16 = vmul.f32 %v529_v33, %v529_v33 }
  0xec   :  { %479 = vst [vmem:[%s669_s2 + $0x20] sm:$0xff] %v459_v31   ;;  %v192_v37 = vpop.f32.mrf.mxu0  ;;  %v224_v38 = vpop.f32.mrf.mxu1 }
  0xed   :  { %v358_v40 = vadd.f32 %v357_v36, %v343_v34  ;;  %v321_v41 = vadd.f32 %v518_v21, %v320_v35  ;;  %v345_v45 = vmul.f32 %v192_v37, %v192_v37  ;;  %v353_v11 = vmul.f32 %v224_v38, %v224_v38 }
  0xee   :  { %v522_v42 = vpop.f32.mrf.mxu0  ;;  %v530_v43 = vpop.f32.mrf.mxu1 }
  0xef   :  { %v322_v44 = vadd.f32 %v321_v41, %v192_v37  ;;  %v359_v46 = vadd.f32 %v358_v40, %v344_v39  ;;  %v454_v47 = vpack.c.bf16 %v522_v42, %v521_v32  ;;  %v474_v49 = vpack.c.bf16 %v530_v43, %v529_v33 }
  0xf0   :  { %v195_v48 = vpop.f32.mrf.mxu0  ;;  %v227_v50 = vpop.f32.mrf.mxu1  ;;  %v348_v59 = vmul.f32 %v522_v42, %v522_v42  ;;  %v356_v21 = vmul.f32 %v530_v43, %v530_v43 }
  0xf1   :  { %v360_v51 = vadd.f32 %v359_v46, %v345_v45  ;;  %478 = vst [vmem:[%s669_s2 + $0x18] sm:$0xff] %v454_v47   ;;  %v449_v52 = vpack.c.bf16 %v195_v48, %v192_v37  ;;  %v323_v53 = vadd.f32 %v322_v44, %v195_v48  ;;  %v346_v54 = vmul.f32 %v195_v48, %v195_v48 }
  0xf2   :  { %482 = vst [vmem:[%s669_s2 + $0x38] sm:$0xff] %v474_v49   ;;  %v469_v55 = vpack.c.bf16 %v227_v50, %v224_v38  ;;  %v354_v15 = vmul.f32 %v227_v50, %v227_v50 }
  0xf3   :  { %477 = vst [vmem:[%s669_s2 + $0x10] sm:$0xff] %v449_v52   ;;  %v324_v57 = vadd.f32 %v521_v32, %v323_v53  ;;  %v361_v58 = vadd.f32 %v360_v51, %v346_v54 }
  0xf4   :  { %481 = vst [vmem:[%s669_s2 + $0x30] sm:$0xff] %v469_v55  }
  0xf5   :  { %v325_v60 = vadd.f32 %v522_v42, %v324_v57  ;;  %v362_v61 = vadd.f32 %v361_v58, %v347_v56 }
  0xf7   :  { %v363_v63 = vadd.f32 %v362_v61, %v348_v59  ;;  %v326_v0 = vadd.f32 %v325_v60, %v208_v20 }
  0xf9   :  { %v327_v1 = vadd.f32 %v326_v0, %v211_v27  ;;  %v364_v3 = vadd.f32 %v363_v63, %v349_v62 }
  0xfb   :  { %v328_v5 = vadd.f32 %v525_v18, %v327_v1  ;;  %v365_v6 = vadd.f32 %v364_v3, %v350_v2 }
  0xfd   :  { %v366_v8 = vadd.f32 %v365_v6, %v351_v4  ;;  %v329_v9 = vadd.f32 %v526_v22, %v328_v5 }
  0xff   :  { %v330_v10 = vadd.f32 %v329_v9, %v224_v38  ;;  %v367_v12 = vadd.f32 %v366_v8, %v352_v7 }
 0x101   :  { %v368_v13 = vadd.f32 %v367_v12, %v353_v11  ;;  %v331_v14 = vadd.f32 %v330_v10, %v227_v50 }
 0x103   :  { %v332_v17 = vadd.f32 %v529_v33, %v331_v14  ;;  %v369_v19 = vadd.f32 %v368_v13, %v354_v15 }
 0x105   :  { %v333_v20 = vadd.f32 %v530_v43, %v332_v17  ;;  %v370_v23 = vadd.f32 %v369_v19, %v355_v16 }
 0x107   :  { %v334_v24 = vrot.slane %v333_v20, 4  ;;  %v371_v25 = vadd.f32 %v370_v23, %v356_v21 }
 0x109   :  { %v335_v26 = vadd.f32 %v334_v24, %v333_v20  ;;  %v372_v18 = vrot.slane %v371_v25, 4 }
 0x10b   :  { %v336_v27 = vrot.slane %v335_v26, 2  ;;  %v373_v28 = vadd.f32 %v372_v18, %v371_v25 }
 0x10d   :  { %v337_v29 = vadd.f32 %v336_v27, %v335_v26  ;;  %v374_v22 = vrot.slane %v373_v28, 2 }
 0x10f   :  { %v338_v30 = vrot.slane %v337_v29, 1  ;;  %v375_v31 = vadd.f32 %v374_v22, %v373_v28 }
 0x111   :  { %v339_v32 = vadd.f32 %v338_v30, %v337_v29  ;;  %v376_v34 = vrot.slane %v375_v31, 1 }
 0x113   :  { %340 = vst [vmem:[%s668_s3] sm:$0x1] %v339_v32  ;;  %v377_v33 = vadd.f32 %v376_v34, %v375_v31 }
 0x115   :  { %378 = vst [vmem:[%s668_s3 + $0x1] sm:$0x1] %v377_v33 }

// kernel: block_forward.7
= control target key start
LH: loop header
LB: loop body
LE: loop exit
PB: predicated region body
PF: predicated region fallthrough
CT: control target
= control target key end

     0   :  { %s623_s0 = inlined_call_operand.vmem [shape: bf16[128,128], index: 0, kind: input, shape index: {}]   ;;  %s624_s1 = inlined_call_operand.vmem [shape: f32[8,128], index: 1, kind: input, shape index: {}]   ;;  %s625_s2 = inlined_call_operand.vmem [shape: bf16[128,128], index: 2, kind: input, shape index: {}]   ;;  %s626_s3 = inlined_call_operand.vmem [shape: f32[8,128], index: 3, kind: input, shape index: {}]   ;;  %s627_s4 = inlined_call_operand.vmem [shape: bf16[128,128], index: 4, kind: output, shape index: {}]  }
   0x1   :  { %v318_v0 = vld [vmem:[%s623_s0] sm:$0xff]   ;;  %v421_v9 = vld [vmem:[%s623_s0 + $0x8] sm:$0xff]   ;;  %v422_v20 = vld [vmem:[%s623_s0 + $0x10] sm:$0xff]  }
   0x2   :  { %v473_v1 = vld [vmem:[%s624_s1] ss:$0 sm:$0xff]  ;;  %v319_v2 = vunpack.c.l.bf16 %v318_v0  ;;  %v320_v3 = vunpack.c.h.bf16 %v318_v0  ;;  %v486_v6 = vld [vmem:[%s624_s1 + $0x1] ss:$0 sm:$0xff]  ;;  %v428_v10 = vld [vmem:[%s625_s2 + $0x8] sm:$0xff]   ;;  %v323_v14 = vunpack.c.l.bf16 %v421_v9  ;;  %v324_v15 = vunpack.c.h.bf16 %v421_v9 }
   0x3   :  { %v350_v4 = vld [vmem:[%s625_s2] sm:$0xff]   ;;  %v355_v18 = vunpack.c.l.bf16 %v428_v10  ;;  %v356_v19 = vunpack.c.h.bf16 %v428_v10  ;;  %v429_v29 = vld [vmem:[%s625_s2 + $0x10] sm:$0xff]   ;;  %v327_v32 = vunpack.c.l.bf16 %v422_v20  ;;  %v328_v33 = vunpack.c.h.bf16 %v422_v20  ;;  %v423_v42 = vld [vmem:[%s623_s0 + $0x18] sm:$0xff]  }
   0x4   :  { %v481_v5 = vld [vmem:[%s626_s3] ss:$0 sm:$0xff]  ;;  %v351_v7 = vunpack.c.l.bf16 %v350_v4  ;;  %v352_v8 = vunpack.c.h.bf16 %v350_v4  ;;  %v54_v11 = vmul.f32 %v319_v2, %v473_v1  ;;  %v55_v12 = vmul.f32 %v320_v3, %v473_v1  ;;  %v499_v13 = vld [vmem:[%s626_s3 + $0x1] ss:$0 sm:$0xff]  ;;  %v430_v47 = vld [vmem:[%s625_s2 + $0x18] sm:$0xff]  }
   0x5   :  { %v56_v23 = vmul.f32 %v323_v14, %v473_v1  ;;  %v57_v24 = vmul.f32 %v324_v15, %v473_v1  ;;  %v130_v27 = vmul.f32 %v355_v18, %v481_v5  ;;  %v131_v28 = vmul.f32 %v356_v19, %v481_v5  ;;  %v424_v52 = vld [vmem:[%s623_s0 + $0x20] sm:$0xff]   ;;  %v425_v14 = vld [vmem:[%s623_s0 + $0x28] sm:$0xff]  }
   0x6   :  { %v128_v16 = vmul.f32 %v351_v7, %v481_v5  ;;  %v129_v17 = vmul.f32 %v352_v8, %v481_v5  ;;  %v75_v21 = vadd.f32 %v486_v6, %v54_v11  ;;  %v76_v22 = vadd.f32 %v486_v6, %v55_v12  ;;  %v431_v8 = vld [vmem:[%s625_s2 + $0x20] sm:$0xff]  }
   0x7   :  { %v77_v30 = vadd.f32 %v486_v6, %v56_v23  ;;  %v78_v31 = vadd.f32 %v486_v6, %v57_v24  ;;  %v151_v36 = vadd.f32 %v499_v13, %v130_v27  ;;  %v152_v37 = vadd.f32 %v499_v13, %v131_v28  ;;  %v432_v23 = vld [vmem:[%s625_s2 + $0x28] sm:$0xff]  }
   0x8   :  { %v149_v25 = vadd.f32 %v499_v13, %v128_v16  ;;  %v150_v26 = vadd.f32 %v499_v13, %v129_v17  ;;  %v58_v38 = vmul.f32 %v327_v32, %v473_v1  ;;  %v59_v39 = vmul.f32 %v328_v33, %v473_v1  ;;  %v426_v32 = vld [vmem:[%s623_s0 + $0x30] sm:$0xff]  }
   0x9   :  { %v359_v40 = vunpack.c.l.bf16 %v429_v29  ;;  %v360_v41 = vunpack.c.h.bf16 %v429_v29  ;;  %v167_v45 = vadd.f32 %v151_v36, %v77_v30  ;;  %v168_v46 = vadd.f32 %v152_v37, %v78_v31 }
   0xa   :  { %v165_v34 = vadd.f32 %v149_v25, %v75_v21  ;;  %v166_v35 = vadd.f32 %v150_v26, %v76_v22  ;;  %v79_v48 = vadd.f32 %v486_v6, %v58_v38  ;;  %v80_v49 = vadd.f32 %v486_v6, %v59_v39 }
   0xb   :  { %v132_v50 = vmul.f32 %v359_v40, %v481_v5  ;;  %v133_v51 = vmul.f32 %v360_v41, %v481_v5  ;;  %v183_v54 = vmax.f32 %v167_v45, 0.0  ;;  %v184_v55 = vmax.f32 %v168_v46, 0.0  ;;  %v433_v45 = vld [vmem:[%s625_s2 + $0x30] sm:$0xff]  }
   0xc   :  { %v181_v43 = vmax.f32 %v165_v34, 0.0  ;;  %v182_v44 = vmax.f32 %v166_v35, 0.0  ;;  %v331_v56 = vunpack.c.l.bf16 %v423_v42  ;;  %v332_v59 = vunpack.c.h.bf16 %v423_v42 }
   0xd   :  { %v153_v57 = vadd.f32 %v499_v13, %v132_v50  ;;  %v154_v58 = vadd.f32 %v499_v13, %v133_v51  ;;  %v363_v60 = vunpack.c.l.bf16 %v430_v47  ;;  %v389_v61 = vpack.c.bf16 %v184_v55, %v183_v54  ;;  %v427_v54 = vld [vmem:[%s623_s0 + $0x38] sm:$0xff]  }
   0xe   :  { %v384_v53 = vpack.c.bf16 %v182_v44, %v181_v43  ;;  %v60_v62 = vmul.f32 %v331_v56, %v473_v1  ;;  %v364_v63 = vunpack.c.h.bf16 %v430_v47  ;;  %v335_v0 = vunpack.c.l.bf16 %v424_v52 }
   0xf   :  { %v169_v2 = vadd.f32 %v153_v57, %v79_v48  ;;  %v170_v3 = vadd.f32 %v154_v58, %v80_v49  ;;  %v61_v4 = vmul.f32 %v332_v59, %v473_v1  ;;  %v134_v7 = vmul.f32 %v363_v60, %v481_v5  ;;  %435 = vst [vmem:[%s627_s4 + $0x8] sm:$0xff] %v389_v61  }
  0x10   :  { %385 = vst [vmem:[%s627_s4] sm:$0xff] %v384_v53   ;;  %v81_v9 = vadd.f32 %v486_v6, %v60_v62  ;;  %v135_v10 = vmul.f32 %v364_v63, %v481_v5  ;;  %v336_v11 = vunpack.c.h.bf16 %v424_v52  ;;  %v62_v12 = vmul.f32 %v335_v0, %v473_v1 }
  0x11   :  { %v185_v15 = vmax.f32 %v169_v2, 0.0  ;;  %v186_v16 = vmax.f32 %v170_v3, 0.0  ;;  %v82_v17 = vadd.f32 %v486_v6, %v61_v4  ;;  %v155_v18 = vadd.f32 %v499_v13, %v134_v7  ;;  %v434_v4 = vld [vmem:[%s625_s2 + $0x38] sm:$0xff]  }
  0x12   :  { %v156_v19 = vadd.f32 %v499_v13, %v135_v10  ;;  %v63_v20 = vmul.f32 %v336_v11, %v473_v1  ;;  %v83_v21 = vadd.f32 %v486_v6, %v62_v12  ;;  %v367_v22 = vunpack.c.l.bf16 %v431_v8 }
  0x13   :  { %v394_v24 = vpack.c.bf16 %v186_v16, %v185_v15  ;;  %v171_v25 = vadd.f32 %v155_v18, %v81_v9  ;;  %v368_v26 = vunpack.c.h.bf16 %v431_v8  ;;  %v339_v27 = vunpack.c.l.bf16 %v425_v14 }
  0x14   :  { %v172_v28 = vadd.f32 %v156_v19, %v82_v17  ;;  %v84_v29 = vadd.f32 %v486_v6, %v63_v20  ;;  %v136_v30 = vmul.f32 %v367_v22, %v481_v5  ;;  %v340_v31 = vunpack.c.h.bf16 %v425_v14 }
  0x15   :  { %436 = vst [vmem:[%s627_s4 + $0x10] sm:$0xff] %v394_v24   ;;  %v187_v33 = vmax.f32 %v171_v25, 0.0  ;;  %v137_v34 = vmul.f32 %v368_v26, %v481_v5  ;;  %v64_v35 = vmul.f32 %v339_v27, %v473_v1  ;;  %v371_v36 = vunpack.c.l.bf16 %v432_v23 }
  0x16   :  { %v188_v37 = vmax.f32 %v172_v28, 0.0  ;;  %v157_v38 = vadd.f32 %v499_v13, %v136_v30  ;;  %v65_v39 = vmul.f32 %v340_v31, %v473_v1  ;;  %v372_v40 = vunpack.c.h.bf16 %v432_v23 }
  0x17   :  { %v158_v41 = vadd.f32 %v499_v13, %v137_v34  ;;  %v85_v42 = vadd.f32 %v486_v6, %v64_v35  ;;  %v138_v43 = vmul.f32 %v371_v36, %v481_v5  ;;  %v343_v44 = vunpack.c.l.bf16 %v426_v32 }
  0x18   :  { %v399_v46 = vpack.c.bf16 %v188_v37, %v187_v33  ;;  %v173_v47 = vadd.f32 %v157_v38, %v83_v21  ;;  %v86_v48 = vadd.f32 %v486_v6, %v65_v39  ;;  %v139_v49 = vmul.f32 %v372_v40, %v481_v5 }
  0x19   :  { %v174_v50 = vadd.f32 %v158_v41, %v84_v29  ;;  %v159_v51 = vadd.f32 %v499_v13, %v138_v43  ;;  %v344_v52 = vunpack.c.h.bf16 %v426_v32  ;;  %v66_v53 = vmul.f32 %v343_v44, %v473_v1 }
  0x1a   :  { %437 = vst [vmem:[%s627_s4 + $0x18] sm:$0xff] %v399_v46   ;;  %v189_v55 = vmax.f32 %v173_v47, 0.0  ;;  %v160_v56 = vadd.f32 %v499_v13, %v139_v49  ;;  %v375_v57 = vunpack.c.l.bf16 %v433_v45  ;;  %v376_v58 = vunpack.c.h.bf16 %v433_v45 }
  0x1b   :  { %v190_v59 = vmax.f32 %v174_v50, 0.0  ;;  %v175_v60 = vadd.f32 %v159_v51, %v85_v42  ;;  %v67_v61 = vmul.f32 %v344_v52, %v473_v1  ;;  %v87_v62 = vadd.f32 %v486_v6, %v66_v53 }
  0x1c   :  { %v176_v63 = vadd.f32 %v160_v56, %v86_v48  ;;  %v140_v0 = vmul.f32 %v375_v57, %v481_v5  ;;  %v141_v2 = vmul.f32 %v376_v58, %v481_v5  ;;  %v347_v3 = vunpack.c.l.bf16 %v427_v54 }
  0x1d   :  { %v404_v7 = vpack.c.bf16 %v190_v59, %v189_v55  ;;  %v191_v8 = vmax.f32 %v175_v60, 0.0  ;;  %v88_v9 = vadd.f32 %v486_v6, %v67_v61  ;;  %v348_v10 = vunpack.c.h.bf16 %v427_v54 }
  0x1e   :  { %v192_v11 = vmax.f32 %v176_v63, 0.0  ;;  %v161_v12 = vadd.f32 %v499_v13, %v140_v0  ;;  %v162_v14 = vadd.f32 %v499_v13, %v141_v2  ;;  %v68_v15 = vmul.f32 %v347_v3, %v473_v1 }
  0x1f   :  { %438 = vst [vmem:[%s627_s4 + $0x20] sm:$0xff] %v404_v7   ;;  %v69_v16 = vmul.f32 %v348_v10, %v473_v1  ;;  %v379_v17 = vunpack.c.l.bf16 %v434_v4  ;;  %v380_v18 = vunpack.c.h.bf16 %v434_v4 }
  0x20   :  { %v409_v19 = vpack.c.bf16 %v192_v11, %v191_v8  ;;  %v177_v20 = vadd.f32 %v161_v12, %v87_v62  ;;  %v178_v21 = vadd.f32 %v162_v14, %v88_v9  ;;  %v89_v22 = vadd.f32 %v486_v6, %v68_v15 }
  0x21   :  { %v90_v23 = vadd.f32 %v486_v6, %v69_v16  ;;  %v142_v24 = vmul.f32 %v379_v17, %v481_v5  ;;  %v143_v25 = vmul.f32 %v380_v18, %v481_v5 }
  0x22   :  { %439 = vst [vmem:[%s627_s4 + $0x28] sm:$0xff] %v409_v19   ;;  %v193_v26 = vmax.f32 %v177_v20, 0.0  ;;  %v194_v27 = vmax.f32 %v178_v21, 0.0 }
  0x23   :  { %v163_v1 = vadd.f32 %v499_v13, %v142_v24  ;;  %v164_v28 = vadd.f32 %v499_v13, %v143_v25 }
  0x24   :  { %v414_v29 = vpack.c.bf16 %v194_v27, %v193_v26 }
  0x25   :  { %v179_v30 = vadd.f32 %v163_v1, %v89_v22  ;;  %v180_v31 = vadd.f32 %v164_v28, %v90_v23 }
  0x26   :  { %440 = vst [vmem:[%s627_s4 + $0x30] sm:$0xff] %v414_v29  }
  0x27   :  { %v195_v6 = vmax.f32 %v179_v30, 0.0  ;;  %v196_v32 = vmax.f32 %v180_v31, 0.0 }
  0x29   :  { %v419_v5 = vpack.c.bf16 %v196_v32, %v195_v6 }
  0x2b   :  { %441 = vst [vmem:[%s627_s4 + $0x38] sm:$0xff] %v419_v5  }

// kernel: block_forward.6
= control target key start
LH: loop header
LB: loop body
LE: loop exit
PB: predicated region body
PF: predicated region fallthrough
CT: control target
= control target key end

     0   :  { %v1089_v32 = vmov 0.0   ;;  %s1292_s1 = inlined_call_operand.vmem [shape: bf16[128,128], index: 1, kind: input, shape index: {}]   ;;  %s1293_s3 = inlined_call_operand.vmem [shape: bf16[128,128], index: 3, kind: input, shape index: {}]   ;;  %s1294_s0 = inlined_call_operand.vmem [shape: bf16[128,128], index: 0, kind: input, shape index: {}]   ;;  %s1295_s2 = inlined_call_operand.vmem [shape: bf16[128,128], index: 2, kind: input, shape index: {}]   ;;  %s1296_s5 = inlined_call_operand.vmem [shape: f32[8,128], index: 5, kind: output, shape index: {1}]   ;;  %s1297_s7 = inlined_call_operand.vmem [shape: f32[8,128], index: 7, kind: output, shape index: {3}]   ;;  %s1298_s4 = inlined_call_operand.vmem [shape: bf16[128,128], index: 4, kind: output, shape index: {0}]   ;;  %s1299_s6 = inlined_call_operand.vmem [shape: bf16[128,128], index: 6, kind: output, shape index: {2}]  }
   0x1   :  { %v1057_v0 = vld [vmem:[%s1292_s1 + $0x38] sm:$0xff]   ;;  %v1059_v2 = vld [vmem:[%s1292_s1 + $0x30] sm:$0xff]   ;;  %v1061_v4 = vld [vmem:[%s1292_s1 + $0x28] sm:$0xff]   ;;  %387 = vst [vmem:[%s1296_s5 + $0x2] sm:$0x3f] %v1089_v32 }
   0x2   :  { %v1058_v1 = vld [vmem:[%s1293_s3 + $0x38] sm:$0xff]   ;;  %992 = vmatprep.subr.bf16.mxu0 %v1057_v0  ;;  %v1060_v3 = vld [vmem:[%s1293_s3 + $0x30] sm:$0xff]   ;;  %v1062_v5 = vld [vmem:[%s1293_s3 + $0x28] sm:$0xff]   ;;  %753 = vst [vmem:[%s1297_s7 + $0x2] sm:$0x3f] %v1089_v32 }
   0x3   :  { %1024 = vmatprep.subr.bf16.mxu1 %v1058_v1  ;;  %993 = vmatpush3.bf16.msra.mxu0 %v1057_v0  ;;  %v1063_v6 = vld [vmem:[%s1292_s1 + $0x20] sm:$0xff]   ;;  %v1065_v8 = vld [vmem:[%s1292_s1 + $0x18] sm:$0xff]   ;;  %v1067_v10 = vld [vmem:[%s1292_s1 + $0x10] sm:$0xff]  }
   0x4   :  { %1025 = vmatpush3.bf16.msra.mxu1 %v1058_v1  ;;  %994 = vmatprep.subr.bf16.mxu0 %v1059_v2  ;;  %v1064_v7 = vld [vmem:[%s1293_s3 + $0x20] sm:$0xff]   ;;  %v1066_v9 = vld [vmem:[%s1293_s3 + $0x18] sm:$0xff]   ;;  %v1068_v11 = vld [vmem:[%s1293_s3 + $0x10] sm:$0xff]  }
   0x5   :  { %1026 = vmatprep.subr.bf16.mxu1 %v1060_v3  ;;  %v1073_v12 = vld [vmem:[%s1294_s0] sm:$0xff]   ;;  %v1069_v14 = vld [vmem:[%s1292_s1 + $0x8] sm:$0xff]   ;;  %v1077_v20 = vld [vmem:[%s1294_s0 + $0x10] sm:$0xff]  }
   0x6   :  { %v1074_v13 = vld [vmem:[%s1295_s2] sm:$0xff]   ;;  %1008 = vmatprep.mubr.bf16.mxu0 %v1073_v12  ;;  %v1070_v15 = vld [vmem:[%s1293_s3 + $0x8] sm:$0xff]   ;;  %v1078_v21 = vld [vmem:[%s1295_s2 + $0x10] sm:$0xff]  }
   0x7   :  { %995 = vmatpush3.bf16.msra.mxu0 %v1059_v2  ;;  %1040 = vmatprep.mubr.bf16.mxu1 %v1074_v13  ;;  %v1071_v16 = vld [vmem:[%s1292_s1] sm:$0xff]   ;;  %v1075_v18 = vld [vmem:[%s1294_s0 + $0x8] sm:$0xff]   ;;  %v1079_v22 = vld [vmem:[%s1294_s0 + $0x18] sm:$0xff]  }
   0x8   :  { %1027 = vmatpush3.bf16.msra.mxu1 %v1060_v3  ;;  %996 = vmatprep.subr.bf16.mxu0 %v1061_v4  ;;  %v1072_v17 = vld [vmem:[%s1293_s3] sm:$0xff]   ;;  %v1076_v19 = vld [vmem:[%s1295_s2 + $0x8] sm:$0xff]   ;;  %v1080_v23 = vld [vmem:[%s1295_s2 + $0x18] sm:$0xff]  }
   0x9   :  { %1028 = vmatprep.subr.bf16.mxu1 %v1062_v5  ;;  %v1081_v24 = vld [vmem:[%s1294_s0 + $0x20] sm:$0xff]   ;;  %v1083_v26 = vld [vmem:[%s1294_s0 + $0x28] sm:$0xff]   ;;  %v1085_v28 = vld [vmem:[%s1294_s0 + $0x30] sm:$0xff]  }
   0xa   :  { %v1082_v25 = vld [vmem:[%s1295_s2 + $0x20] sm:$0xff]   ;;  %v1084_v27 = vld [vmem:[%s1295_s2 + $0x28] sm:$0xff]   ;;  %v1086_v29 = vld [vmem:[%s1295_s2 + $0x30] sm:$0xff]  }
   0xb   :  { %997 = vmatpush3.bf16.msra.mxu0 %v1061_v4  ;;  %v1087_v30 = vld [vmem:[%s1294_s0 + $0x38] sm:$0xff]  }
   0xc   :  { %1029 = vmatpush3.bf16.msra.mxu1 %v1062_v5  ;;  %998 = vmatprep.subr.bf16.mxu0 %v1063_v6  ;;  %v1088_v31 = vld [vmem:[%s1295_s2 + $0x38] sm:$0xff]  }
   0xd   :  { %1030 = vmatprep.subr.bf16.mxu1 %v1064_v7 }
   0xf   :  { %999 = vmatpush3.bf16.msra.mxu0 %v1063_v6 }
  0x10   :  { %1031 = vmatpush3.bf16.msra.mxu1 %v1064_v7  ;;  %1000 = vmatprep.subr.bf16.mxu0 %v1065_v8 }
  0x11   :  { %1032 = vmatprep.subr.bf16.mxu1 %v1066_v9 }
  0x13   :  { %1001 = vmatpush3.bf16.msra.mxu0 %v1065_v8 }
  0x14   :  { %1033 = vmatpush3.bf16.msra.mxu1 %v1066_v9  ;;  %1002 = vmatprep.subr.bf16.mxu0 %v1067_v10 }
  0x15   :  { %1034 = vmatprep.subr.bf16.mxu1 %v1068_v11 }
  0x17   :  { %1003 = vmatpush3.bf16.msra.mxu0 %v1067_v10 }
  0x18   :  { %1035 = vmatpush3.bf16.msra.mxu1 %v1068_v11  ;;  %1004 = vmatprep.subr.bf16.mxu0 %v1069_v14 }
  0x19   :  { %1036 = vmatprep.subr.bf16.mxu1 %v1070_v15 }
  0x1b   :  { %1005 = vmatpush3.bf16.msra.mxu0 %v1069_v14 }
  0x1c   :  { %1037 = vmatpush3.bf16.msra.mxu1 %v1070_v15  ;;  %1006 = vmatprep.subr.bf16.mxu0 %v1071_v16 }
  0x1d   :  { %1038 = vmatprep.subr.bf16.mxu1 %v1072_v17 }
  0x1f   :  { %1007 = vmatpush3.bf16.msra.mxu0 %v1071_v16 }
  0x20   :  { %1039 = vmatpush3.bf16.msra.mxu1 %v1072_v17 }
  0x22   :  { %1009 = vmatmul.mubr.bf16.vlgmr.msra.gmra.mxu0 %v1075_v18 }
  0x23   :  { %1041 = vmatmul.mubr.bf16.vlgmr.msra.gmra.mxu1 %v1076_v19  ;;  %1012 = vmatprep.mubr.bf16.mxu0 %v1077_v20 }
  0x24   :  { %1044 = vmatprep.mubr.bf16.mxu1 %v1078_v21 }
  0x2a   :  { %1013 = vmatmul.mubr.bf16.gmra.mxu0 %v1079_v22 }
  0x2b   :  { %1045 = vmatmul.mubr.bf16.gmra.mxu1 %v1080_v23  ;;  %1016 = vmatprep.mubr.bf16.mxu0 %v1081_v24 }
  0x2c   :  { %1048 = vmatprep.mubr.bf16.mxu1 %v1082_v25 }
  0x32   :  { %1017 = vmatmul.mubr.bf16.gmra.mxu0 %v1083_v26 }
  0x33   :  { %1049 = vmatmul.mubr.bf16.gmra.mxu1 %v1084_v27  ;;  %1020 = vmatprep.mubr.bf16.mxu0 %v1085_v28 }
  0x34   :  { %1052 = vmatprep.mubr.bf16.mxu1 %v1086_v29 }
  0x3a   :  { %1021 = vmatmul.mubr.bf16.gmra.mxu0 %v1087_v30 }
  0x3b   :  { %1053 = vmatmul.mubr.bf16.gmra.mxu1 %v1088_v31 }
  0xe2   :  { %v1010_v33 = vpop.f32.mrf.mxu0 }
  0xe3   :  { %v1042_v34 = vpop.f32.mrf.mxu1  ;;  %v351_v52 = vmul.f32 %v1010_v33, %v1010_v33 }
  0xe4   :  { %v184_v35 = vpop.f32.mrf.mxu0  ;;  %v717_v56 = vmul.f32 %v1042_v34, %v1042_v34 }
  0xe5   :  { %v550_v36 = vpop.f32.mrf.mxu1  ;;  %v349_v42 = vmul.f32 %v184_v35, %v184_v35 }
  0xe6   :  { %v1011_v37 = vpop.f32.mrf.mxu0  ;;  %v715_v47 = vmul.f32 %v550_v36, %v550_v36 }
  0xe7   :  { %v874_v38 = vpack.c.bf16 %v1011_v37, %v1010_v33  ;;  %v1043_v39 = vpop.f32.mrf.mxu1  ;;  %v352_v60 = vmul.f32 %v1011_v37, %v1011_v37 }
  0xe8   :  { %v914_v40 = vpack.c.bf16 %v1043_v39, %v1042_v34  ;;  %v187_v41 = vpop.f32.mrf.mxu0  ;;  %v718_v0 = vmul.f32 %v1043_v39, %v1043_v39 }
  0xe9   :  { %946 = vst [vmem:[%s1298_s4 + $0x8] sm:$0xff] %v874_v38   ;;  %v869_v43 = vpack.c.bf16 %v187_v41, %v184_v35  ;;  %v327_v44 = vadd.f32 %v187_v41, %v184_v35  ;;  %v350_v45 = vmul.f32 %v187_v41, %v187_v41  ;;  %v553_v46 = vpop.f32.mrf.mxu1 }
  0xea   :  { %953 = vst [vmem:[%s1299_s6 + $0x8] sm:$0xff] %v914_v40   ;;  %v909_v48 = vpack.c.bf16 %v553_v46, %v550_v36  ;;  %v693_v49 = vadd.f32 %v553_v46, %v550_v36  ;;  %v716_v50 = vmul.f32 %v553_v46, %v553_v46  ;;  %v1014_v51 = vpop.f32.mrf.mxu0 }
  0xeb   :  { %870 = vst [vmem:[%s1298_s4] sm:$0xff] %v869_v43   ;;  %v328_v53 = vadd.f32 %v1010_v33, %v327_v44  ;;  %v365_v54 = vadd.f32 %v350_v45, %v349_v42  ;;  %v1046_v55 = vpop.f32.mrf.mxu1  ;;  %v355_v24 = vmul.f32 %v1014_v51, %v1014_v51 }
  0xec   :  { %910 = vst [vmem:[%s1299_s6] sm:$0xff] %v909_v48   ;;  %v694_v57 = vadd.f32 %v1042_v34, %v693_v49  ;;  %v731_v58 = vadd.f32 %v716_v50, %v715_v47  ;;  %v200_v59 = vpop.f32.mrf.mxu0  ;;  %v721_v28 = vmul.f32 %v1046_v55, %v1046_v55 }
  0xed   :  { %v366_v61 = vadd.f32 %v365_v54, %v351_v52  ;;  %v329_v62 = vadd.f32 %v1011_v37, %v328_v53  ;;  %v566_v63 = vpop.f32.mrf.mxu1  ;;  %v353_v5 = vmul.f32 %v200_v59, %v200_v59 }
  0xee   :  { %v732_v1 = vadd.f32 %v731_v58, %v717_v56  ;;  %v695_v2 = vadd.f32 %v1043_v39, %v694_v57  ;;  %v1015_v3 = vpop.f32.mrf.mxu0  ;;  %v719_v10 = vmul.f32 %v566_v63, %v566_v63 }
  0xef   :  { %v330_v4 = vadd.f32 %v329_v62, %v200_v59  ;;  %v367_v6 = vadd.f32 %v366_v61, %v352_v60  ;;  %v884_v7 = vpack.c.bf16 %v1015_v3, %v1014_v51  ;;  %v1047_v8 = vpop.f32.mrf.mxu1  ;;  %v356_v32 = vmul.f32 %v1015_v3, %v1015_v3 }
  0xf0   :  { %v696_v9 = vadd.f32 %v695_v2, %v566_v63  ;;  %v733_v11 = vadd.f32 %v732_v1, %v718_v0  ;;  %v924_v12 = vpack.c.bf16 %v1047_v8, %v1046_v55  ;;  %v203_v13 = vpop.f32.mrf.mxu0  ;;  %v722_v36 = vmul.f32 %v1047_v8, %v1047_v8 }
  0xf1   :  { %v368_v14 = vadd.f32 %v367_v6, %v353_v5  ;;  %948 = vst [vmem:[%s1298_s4 + $0x18] sm:$0xff] %v884_v7   ;;  %v879_v15 = vpack.c.bf16 %v203_v13, %v200_v59  ;;  %v331_v16 = vadd.f32 %v330_v4, %v203_v13  ;;  %v354_v17 = vmul.f32 %v203_v13, %v203_v13  ;;  %v569_v18 = vpop.f32.mrf.mxu1 }
  0xf2   :  { %v734_v19 = vadd.f32 %v733_v11, %v719_v10  ;;  %955 = vst [vmem:[%s1299_s6 + $0x18] sm:$0xff] %v924_v12   ;;  %v919_v20 = vpack.c.bf16 %v569_v18, %v566_v63  ;;  %v697_v21 = vadd.f32 %v696_v9, %v569_v18  ;;  %v720_v22 = vmul.f32 %v569_v18, %v569_v18  ;;  %v1018_v23 = vpop.f32.mrf.mxu0 }
  0xf3   :  { %947 = vst [vmem:[%s1298_s4 + $0x10] sm:$0xff] %v879_v15   ;;  %v332_v25 = vadd.f32 %v1014_v51, %v331_v16  ;;  %v369_v26 = vadd.f32 %v368_v14, %v354_v17  ;;  %v1050_v27 = vpop.f32.mrf.mxu1  ;;  %v359_v60 = vmul.f32 %v1018_v23, %v1018_v23 }
  0xf4   :  { %954 = vst [vmem:[%s1299_s6 + $0x10] sm:$0xff] %v919_v20   ;;  %v698_v29 = vadd.f32 %v1046_v55, %v697_v21  ;;  %v735_v30 = vadd.f32 %v734_v19, %v720_v22  ;;  %v216_v31 = vpop.f32.mrf.mxu0  ;;  %v725_v0 = vmul.f32 %v1050_v27, %v1050_v27 }
  0xf5   :  { %v370_v33 = vadd.f32 %v369_v26, %v355_v24  ;;  %v333_v34 = vadd.f32 %v1015_v3, %v332_v25  ;;  %v582_v35 = vpop.f32.mrf.mxu1  ;;  %v357_v41 = vmul.f32 %v216_v31, %v216_v31 }
  0xf6   :  { %v736_v37 = vadd.f32 %v735_v30, %v721_v28  ;;  %v699_v38 = vadd.f32 %v1047_v8, %v698_v29  ;;  %v1019_v39 = vpop.f32.mrf.mxu0  ;;  %v723_v46 = vmul.f32 %v582_v35, %v582_v35 }
  0xf7   :  { %v334_v40 = vadd.f32 %v333_v34, %v216_v31  ;;  %v371_v42 = vadd.f32 %v370_v33, %v356_v32  ;;  %v894_v43 = vpack.c.bf16 %v1019_v39, %v1018_v23  ;;  %v1051_v44 = vpop.f32.mrf.mxu1  ;;  %v360_v4 = vmul.f32 %v1019_v39, %v1019_v39 }
  0xf8   :  { %v700_v45 = vadd.f32 %v699_v38, %v582_v35  ;;  %v737_v47 = vadd.f32 %v736_v37, %v722_v36  ;;  %v934_v48 = vpack.c.bf16 %v1051_v44, %v1050_v27  ;;  %v219_v49 = vpop.f32.mrf.mxu0  ;;  %v726_v8 = vmul.f32 %v1051_v44, %v1051_v44 }
  0xf9   :  { %v372_v50 = vadd.f32 %v371_v42, %v357_v41  ;;  %950 = vst [vmem:[%s1298_s4 + $0x28] sm:$0xff] %v894_v43   ;;  %v889_v51 = vpack.c.bf16 %v219_v49, %v216_v31  ;;  %v335_v52 = vadd.f32 %v334_v40, %v219_v49  ;;  %v358_v53 = vmul.f32 %v219_v49, %v219_v49  ;;  %v585_v54 = vpop.f32.mrf.mxu1 }
  0xfa   :  { %v738_v55 = vadd.f32 %v737_v47, %v723_v46  ;;  %957 = vst [vmem:[%s1299_s6 + $0x28] sm:$0xff] %v934_v48   ;;  %v929_v56 = vpack.c.bf16 %v585_v54, %v582_v35  ;;  %v701_v57 = vadd.f32 %v700_v45, %v585_v54  ;;  %v724_v58 = vmul.f32 %v585_v54, %v585_v54  ;;  %v1022_v59 = vpop.f32.mrf.mxu0 }
  0xfb   :  { %949 = vst [vmem:[%s1298_s4 + $0x20] sm:$0xff] %v889_v51   ;;  %v336_v61 = vadd.f32 %v1018_v23, %v335_v52  ;;  %v373_v62 = vadd.f32 %v372_v50, %v358_v53  ;;  %v1054_v63 = vpop.f32.mrf.mxu1  ;;  %v363_v31 = vmul.f32 %v1022_v59, %v1022_v59 }
  0xfc   :  { %956 = vst [vmem:[%s1299_s6 + $0x20] sm:$0xff] %v929_v56   ;;  %v702_v1 = vadd.f32 %v1050_v27, %v701_v57  ;;  %v739_v2 = vadd.f32 %v738_v55, %v724_v58  ;;  %v232_v3 = vpop.f32.mrf.mxu0  ;;  %v729_v34 = vmul.f32 %v1054_v63, %v1054_v63 }
  0xfd   :  { %v374_v5 = vadd.f32 %v373_v62, %v359_v60  ;;  %v337_v6 = vadd.f32 %v1019_v39, %v336_v61  ;;  %v598_v7 = vpop.f32.mrf.mxu1  ;;  %v361_v13 = vmul.f32 %v232_v3, %v232_v3 }
  0xfe   :  { %v740_v9 = vadd.f32 %v739_v2, %v725_v0  ;;  %v703_v10 = vadd.f32 %v1051_v44, %v702_v1  ;;  %v1023_v11 = vpop.f32.mrf.mxu0  ;;  %v727_v18 = vmul.f32 %v598_v7, %v598_v7 }
  0xff   :  { %v338_v12 = vadd.f32 %v337_v6, %v232_v3  ;;  %v375_v14 = vadd.f32 %v374_v5, %v360_v4  ;;  %v904_v15 = vpack.c.bf16 %v1023_v11, %v1022_v59  ;;  %v1055_v16 = vpop.f32.mrf.mxu1  ;;  %v364_v37 = vmul.f32 %v1023_v11, %v1023_v11 }
 0x100   :  { %v704_v17 = vadd.f32 %v703_v10, %v598_v7  ;;  %v741_v19 = vadd.f32 %v740_v9, %v726_v8  ;;  %v944_v20 = vpack.c.bf16 %v1055_v16, %v1054_v63  ;;  %v235_v21 = vpop.f32.mrf.mxu0  ;;  %v730_v40 = vmul.f32 %v1055_v16, %v1055_v16 }
 0x101   :  { %v376_v22 = vadd.f32 %v375_v14, %v361_v13  ;;  %952 = vst [vmem:[%s1298_s4 + $0x38] sm:$0xff] %v904_v15   ;;  %v899_v23 = vpack.c.bf16 %v235_v21, %v232_v3  ;;  %v339_v24 = vadd.f32 %v338_v12, %v235_v21  ;;  %v362_v25 = vmul.f32 %v235_v21, %v235_v21  ;;  %v601_v26 = vpop.f32.mrf.mxu1 }
 0x102   :  { %v742_v27 = vadd.f32 %v741_v19, %v727_v18  ;;  %959 = vst [vmem:[%s1299_s6 + $0x38] sm:$0xff] %v944_v20   ;;  %v939_v28 = vpack.c.bf16 %v601_v26, %v598_v7  ;;  %v705_v29 = vadd.f32 %v704_v17, %v601_v26  ;;  %v728_v30 = vmul.f32 %v601_v26, %v601_v26 }
 0x103   :  { %951 = vst [vmem:[%s1298_s4 + $0x30] sm:$0xff] %v899_v23   ;;  %v340_v32 = vadd.f32 %v1022_v59, %v339_v24  ;;  %v377_v33 = vadd.f32 %v376_v22, %v362_v25 }
 0x104   :  { %958 = vst [vmem:[%s1299_s6 + $0x30] sm:$0xff] %v939_v28   ;;  %v706_v35 = vadd.f32 %v1054_v63, %v705_v29  ;;  %v743_v36 = vadd.f32 %v742_v27, %v728_v30 }
 0x105   :  { %v341_v38 = vadd.f32 %v1023_v11, %v340_v32  ;;  %v378_v39 = vadd.f32 %v377_v33, %v363_v31 }
 0x106   :  { %v707_v41 = vadd.f32 %v1055_v16, %v706_v35  ;;  %v744_v42 = vadd.f32 %v743_v36, %v729_v34 }
 0x107   :  { %v342_v43 = vrot.slane %v341_v38, 4  ;;  %v379_v44 = vadd.f32 %v378_v39, %v364_v37 }
 0x108   :  { %v708_v45 = vrot.slane %v707_v41, 4  ;;  %v745_v46 = vadd.f32 %v744_v42, %v730_v40 }
 0x109   :  { %v343_v47 = vadd.f32 %v342_v43, %v341_v38  ;;  %v380_v48 = vrot.slane %v379_v44, 4 }
 0x10a   :  { %v709_v49 = vadd.f32 %v708_v45, %v707_v41  ;;  %v746_v50 = vrot.slane %v745_v46, 4 }
 0x10b   :  { %v344_v51 = vrot.slane %v343_v47, 2  ;;  %v381_v52 = vadd.f32 %v380_v48, %v379_v44 }
 0x10c   :  { %v710_v53 = vrot.slane %v709_v49, 2  ;;  %v747_v54 = vadd.f32 %v746_v50, %v745_v46 }
 0x10d   :  { %v345_v55 = vadd.f32 %v344_v51, %v343_v47  ;;  %v382_v56 = vrot.slane %v381_v52, 2 }
 0x10e   :  { %v711_v57 = vadd.f32 %v710_v53, %v709_v49  ;;  %v748_v58 = vrot.slane %v747_v54, 2 }
 0x10f   :  { %v346_v59 = vrot.slane %v345_v55, 1  ;;  %v383_v60 = vadd.f32 %v382_v56, %v381_v52 }
 0x110   :  { %v712_v61 = vrot.slane %v711_v57, 1  ;;  %v749_v62 = vadd.f32 %v748_v58, %v747_v54 }
 0x111   :  { %v347_v63 = vadd.f32 %v346_v59, %v345_v55  ;;  %v384_v0 = vrot.slane %v383_v60, 1 }
 0x112   :  { %v713_v1 = vadd.f32 %v712_v61, %v711_v57  ;;  %v750_v2 = vrot.slane %v749_v62, 1 }
 0x113   :  { %348 = vst [vmem:[%s1296_s5] sm:$0x1] %v347_v63  ;;  %v385_v3 = vadd.f32 %v384_v0, %v383_v60 }
 0x114   :  { %714 = vst [vmem:[%s1297_s7] sm:$0x1] %v713_v1  ;;  %v751_v4 = vadd.f32 %v750_v2, %v749_v62 }
 0x115   :  { %386 = vst [vmem:[%s1296_s5 + $0x1] sm:$0x1] %v385_v3 }
 0x116   :  { %752 = vst [vmem:[%s1297_s7 + $0x1] sm:$0x1] %v751_v4 }

</bundles_post_ra>
